<compile_context>
chip_gen: v7x
topology: tpu7x:2x2x1
jax: 0.10.0
libtpu: 0.0.40
codegen_flags: <defaults>
</compile_context>

<pallas_src>
import jax
import jax.numpy as jnp
from jax.experimental import pallas as pl
from jax.experimental.pallas import tpu as pltpu

MM_DTYPE = jnp.bfloat16   # MXU operand dtype (accumulation stays f32)


# ---------------------------------------------------------------------------
# Fused kernel: all TemporalBlocks + head in one pallas_call
# ---------------------------------------------------------------------------
def _make_fused_tcn_kernel(block_meta, *, kernel_size, B, T, pad_rows):
    K = kernel_size
    BT = B * T
    PAD = pad_rows

    def kernel(*refs):
        refs = list(refs)
        stack_ref = refs.pop()                      # VMEM scratch (PAD+BT, K*c_max) f32
        o_ref = refs.pop()                          # (B, n_out)
        it = iter(refs)
        x_ref = next(it)                            # (BT, C_in0)
        blocks = []
        for meta in block_meta:
            w1, b1, w2, b2 = next(it), next(it), next(it), next(it)
            wd = next(it) if meta["has_downsample"] else None
            bd = next(it) if meta["has_downsample"] else None
            blocks.append((w1, b1, w2, b2, wd, bd))
        l1w, l1b, l2w, l2b = next(it), next(it), next(it), next(it)

        # time index of every flattened (b, t) row (for causal masking)
        t_row = jax.lax.broadcasted_iota(jnp.int32, (BT, 1), 0) % T

        def causal_dilated_conv(h, w_ref, b_ref, dilation):
            """h: (BT, C_in) f32;  w_ref: (K*C_in, C_out) bf16, stacked k-major.

            out[b, t] = sum_k h[b, t - (K-1-k)*dilation] @ w[k]   (causal conv)
            realised as ONE matmul: tap k is staged into lane group k of the
            zero-padded scratch, shifted down by its causal offset, and the
            stacked (BT, K*C_in) operand is read back as a single static slice.
            """
            c_in = h.shape[1]
            kc = K * c_in
            # Re-zero the causal pad rows (tiny (PAD, lanes) store).
            stack_ref[0:PAD, :] = jnp.zeros((PAD, stack_ref.shape[1]), jnp.float32)
            for k in range(K):
                s = (K - 1 - k) * dilation          # causal left shift of tap k
                lo = k * c_in
                if s == 0:
                    stack_ref[0:BT, lo:lo + c_in] = h
                else:
                    # zero rows whose shifted output time would cross a batch edge
                    masked = jnp.where(t_row < (T - s), h, 0.0)
                    stack_ref[s:s + BT, lo:lo + c_in] = masked
            x_stack = stack_ref[0:BT, 0:kc].astype(w_ref.dtype)
            acc = jnp.dot(x_stack, w_ref[...],
                          preferred_element_type=jnp.float32)
            return acc + b_ref[...]                 # bias broadcast once per conv

        h = x_ref[...].astype(jnp.float32)          # (BT, C_in0)
        for (w1, b1, w2, b2, wd, bd), meta in zip(blocks, block_meta):
            d = meta["dilation"]
            # conv1 -> chomp -> relu -> dropout(identity)
            h1 = jnp.maximum(causal_dilated_conv(h, w1, b1, d), 0.0)
            # conv2 -> chomp -> relu -> dropout(identity)
            h2 = jnp.maximum(causal_dilated_conv(h1, w2, b2, d), 0.0)
            if meta["has_downsample"]:              # 1x1-conv residual
                res = jnp.dot(h.astype(wd.dtype), wd[...],
                              preferred_element_type=jnp.float32) + bd[...]
            else:                                   # identity residual
                res = h
            h = jnp.maximum(h2 + res, 0.0)          # (BT, C_out)

        # Head: grab the last time step of each sequence with a one-hot
        # selection matmul (no strided gather / reshape), then
        # Linear -> ReLU -> Linear.  Only this (B, n_out) slab goes to HBM.
        col = jax.lax.broadcasted_iota(jnp.int32, (B, BT), 1)
        row = jax.lax.broadcasted_iota(jnp.int32, (B, BT), 0)
        sel = (col == row * T + (T - 1)).astype(jnp.float32)
        h_last = jnp.dot(sel, h, preferred_element_type=jnp.float32)   # (B, C_last)

        z = jnp.dot(h_last.astype(l1w.dtype), l1w[...],
                    preferred_element_type=jnp.float32) + l1b[...]
        z = jnp.maximum(z, 0.0)
        out = jnp.dot(z.astype(l2w.dtype), l2w[...],
                      preferred_element_type=jnp.float32) + l2b[...]
        o_ref[...] = out.astype(o_ref.dtype)

    return kernel


def _const_index_map(ndim):
    return lambda i: (0,) * ndim


# ---------------------------------------------------------------------------
# Wrapper
# ---------------------------------------------------------------------------
def temporal_conv_net_forward(x_ncw, params, kernel_size):
    """x_ncw: (B*N, 1, T) as in the PyTorch module; returns (B*N, num_outputs[1])."""
    B, c_in0, T = x_ncw.shape
    x_flat = jnp.transpose(x_ncw, (0, 2, 1)).reshape(B * T, c_in0).astype(jnp.float32)

    block_meta = tuple(
        dict(dilation=blk["dilation"], has_downsample=blk["has_downsample"])
        for blk in params["blocks"])

    operands = [x_flat]
    for blk in params["blocks"]:
        operands += [blk["w1"], blk["b1"], blk["w2"], blk["b2"]]
        if blk["has_downsample"]:
            operands += [blk["wd"], blk["bd"]]
    operands += [params["lin1_w"], params["lin1_b"],
                 params["lin2_w"], params["lin2_b"]]

    n_out = params["lin2_w"].shape[-1]
    c_max = max([c_in0] + [blk["w2"].shape[-1] for blk in params["blocks"]])
    max_shift = (kernel_size - 1) * max(m["dilation"] for m in block_meta)
    pad_rows = max(8, ((max_shift + 7) // 8) * 8)   # sublane-aligned causal pad

    kernel = _make_fused_tcn_kernel(block_meta, kernel_size=kernel_size,
                                    B=B, T=T, pad_rows=pad_rows)

    in_specs = [pl.BlockSpec(op.shape, _const_index_map(op.ndim)) for op in operands]

    # NOTE(v7x): grid=(1,) keeps this tiny network on one TensorCore.  If B/T
    # ever grow, add a leading batch grid axis with
    # dimension_semantics=("parallel",) so both v7x cores are used, and
    # re-derive the scratch / T tile against the 64 MiB VMEM ceiling.
    return pl.pallas_call(
        kernel,
        out_shape=jax.ShapeDtypeStruct((B, n_out), jnp.float32),
        grid=(1,),
        in_specs=in_specs,
        out_specs=pl.BlockSpec((B, n_out), _const_index_map(2)),
        scratch_shapes=[
            pltpu.VMEM((pad_rows + B * T, kernel_size * c_max), jnp.float32)],
        compiler_params=pltpu.CompilerParams(
            dimension_semantics=("arbitrary",)),
    )(*operands)


# ---------------------------------------------------------------------------
# Parameter construction (deterministic, synthetic), weight_norm folded in
# ---------------------------------------------------------------------------
def _weight_norm(v, g):
    # PyTorch weight_norm(dim=0) for Conv1d weight (C_out, C_in, K):
    # w = g * v / ||v||  with norm over (C_in, K) per output channel.
    norm = jnp.sqrt(jnp.sum(v * v, axis=(1, 2), keepdims=True))
    return g * v / norm


def init_tcn_params(key, num_inputs, num_channels, num_outputs, kernel_size):
    params = {"blocks": []}
    K = kernel_size
    for i, c_out in enumerate(num_channels):
        c_in = num_inputs if i == 0 else num_channels[i - 1]
        key, *ks = jax.random.split(key, 9)
        v1 = 0.01 * jax.random.normal(ks[0], (c_out, c_in, K), jnp.float32)
        g1 = 1.0 + 0.1 * jax.random.normal(ks[1], (c_out, 1, 1), jnp.float32)
        b1 = 0.05 * jax.random.normal(ks[2], (c_out,), jnp.float32)
        v2 = 0.01 * jax.random.normal(ks[3], (c_out, c_out, K), jnp.float32)
        g2 = 1.0 + 0.1 * jax.random.normal(ks[4], (c_out, 1, 1), jnp.float32)
        b2 = 0.05 * jax.random.normal(ks[5], (c_out,), jnp.float32)
        w1 = _weight_norm(v1, g1)                    # (C_out, C_in, K)
        w2 = _weight_norm(v2, g2)                    # (C_out, C_out, K)
        blk = dict(
            # stacked (K*C_in, C_out), k-major -- matches the lane-group order
            # of the in-kernel tap stacking; pre-cast to bf16 for the MXU.
            w1=jnp.transpose(w1, (2, 1, 0)).reshape(K * c_in, c_out).astype(MM_DTYPE),
            b1=b1.reshape(1, c_out),
            w2=jnp.transpose(w2, (2, 1, 0)).reshape(K * c_out, c_out).astype(MM_DTYPE),
            b2=b2.reshape(1, c_out),
            dilation=2 ** i,
            has_downsample=(c_in != c_out))
        if blk["has_downsample"]:
            wd = 0.01 * jax.random.normal(ks[6], (c_out, c_in, 1), jnp.float32)
            bd = 0.05 * jax.random.normal(ks[7], (c_out,), jnp.float32)
            blk["wd"] = jnp.transpose(wd[:, :, 0]).astype(MM_DTYPE)   # (C_in, C_out)
            blk["bd"] = bd.reshape(1, c_out)
        params["blocks"].append(blk)
    key, k1, k2, k3, k4 = jax.random.split(key, 5)
    h, o = num_outputs
    params["lin1_w"] = (0.1 * jax.random.normal(k1, (num_channels[-1], h),
                                                jnp.float32)).astype(MM_DTYPE)
    params["lin1_b"] = 0.05 * jax.random.normal(k2, (h,), jnp.float32).reshape(1, h)
    params["lin2_w"] = (0.1 * jax.random.normal(k3, (h, o),
                                                jnp.float32)).astype(MM_DTYPE)
    params["lin2_b"] = 0.05 * jax.random.normal(k4, (o,), jnp.float32).reshape(1, o)
    return params


# ---------------------------------------------------------------------------
if __name__ == "__main__":
    key = jax.random.PRNGKey(0)
    kx, kp = jax.random.split(key)

    # Small shapes consistent with the module's forward: x is (B*N, 1, T).
    B, T = 8, 16                   # B*T = 128 -> fills the MXU M dimension
    num_inputs = 1
    num_channels = [16, 16]        # block0 has 1x1 downsample, block1 identity residual
    num_outputs = [32, 12]
    kernel_size = 3

    x = jax.random.normal(kx, (B, num_inputs, T), jnp.float32)
    params = init_tcn_params(kp, num_inputs, num_channels, num_outputs, kernel_size)

    fwd = jax.jit(lambda xx: temporal_conv_net_forward(xx, params, kernel_size))
    pred = jax.block_until_ready(fwd(x))
    assert pred.shape == (B, num_outputs[1]), pred.shape

    # Pure-JAX reference with the same bf16-operand / f32-accumulation math.
    def ref_forward(x_ncw):
        K = kernel_size
        h = jnp.transpose(x_ncw, (0, 2, 1))                      # (B, T, C)
        for blk in params["blocks"]:
            d = blk["dilation"]

            def conv(inp, w_stacked, b, d=d):
                t = inp.shape[1]
                taps = [jnp.pad(inp, ((0, 0), ((K - 1 - k) * d, 0), (0, 0)))[:, :t, :]
                        for k in range(K)]
                xs = jnp.concatenate(taps, axis=-1).astype(MM_DTYPE)
                return jnp.einsum("btc,co->bto", xs, w_stacked,
                                  preferred_element_type=jnp.float32) + b

            h1 = jax.nn.relu(conv(h, blk["w1"], blk["b1"]))
            h2 = jax.nn.relu(conv(h1, blk["w2"], blk["b2"]))
            if blk["has_downsample"]:
                res = jnp.einsum("btc,co->bto", h.astype(MM_DTYPE), blk["wd"],
                                 preferred_element_type=jnp.float32) + blk["bd"]
            else:
                res = h
            h = jax.nn.relu(h2 + res)
        hl = h[:, -1, :]                                         # pred = network(x)[:, :, -1]
        z = jax.nn.relu(jnp.dot(hl.astype(MM_DTYPE), params["lin1_w"],
                                preferred_element_type=jnp.float32) + params["lin1_b"])
        return jnp.dot(z.astype(MM_DTYPE), params["lin2_w"],
                       preferred_element_type=jnp.float32) + params["lin2_b"]

    ref = ref_forward(x)
    max_err = float(jnp.max(jnp.abs(pred - ref)))
    assert jnp.allclose(pred, ref, atol=1e-4, rtol=1e-3), max_err

    print("KERNEL_OK")
</pallas_src>

<mosaic_0001>
module attributes {stable_mosaic.version = 11 : i64} {
  func.func @kernel(%arg0: i32, %arg1: memref<128x1xf32, #tpu.memory_space<vmem>>, %arg2: memref<3x16xbf16, #tpu.memory_space<vmem>>, %arg3: memref<1x16xf32, #tpu.memory_space<vmem>>, %arg4: memref<48x16xbf16, #tpu.memory_space<vmem>>, %arg5: memref<1x16xf32, #tpu.memory_space<vmem>>, %arg6: memref<1x16xbf16, #tpu.memory_space<vmem>>, %arg7: memref<1x16xf32, #tpu.memory_space<vmem>>, %arg8: memref<48x16xbf16, #tpu.memory_space<vmem>>, %arg9: memref<1x16xf32, #tpu.memory_space<vmem>>, %arg10: memref<48x16xbf16, #tpu.memory_space<vmem>>, %arg11: memref<1x16xf32, #tpu.memory_space<vmem>>, %arg12: memref<16x32xbf16, #tpu.memory_space<vmem>>, %arg13: memref<1x32xf32, #tpu.memory_space<vmem>>, %arg14: memref<32x12xbf16, #tpu.memory_space<vmem>>, %arg15: memref<1x12xf32, #tpu.memory_space<vmem>>, %arg16: memref<8x12xf32, #tpu.memory_space<vmem>>, %arg17: memref<136x48xf32, #tpu.memory_space<vmem>>) attributes {dimension_semantics = [#tpu.dimension_semantics<arbitrary>], iteration_bounds = array<i64: 1>, scalar_prefetch = 0 : i64, scratch_operands = 1 : i64, tpu.core_type = #tpu.core_type<tc>, window_params = [{pipeline_mode = #tpu.pipeline_mode<synchronous>, transform_indices = @transform_0, window_bounds = array<i64: 128, 1>}, {pipeline_mode = #tpu.pipeline_mode<synchronous>, transform_indices = @transform_1, window_bounds = array<i64: 3, 16>}, {pipeline_mode = #tpu.pipeline_mode<synchronous>, transform_indices = @transform_2, window_bounds = array<i64: 1, 16>}, {pipeline_mode = #tpu.pipeline_mode<synchronous>, transform_indices = @transform_3, window_bounds = array<i64: 48, 16>}, {pipeline_mode = #tpu.pipeline_mode<synchronous>, transform_indices = @transform_4, window_bounds = array<i64: 1, 16>}, {pipeline_mode = #tpu.pipeline_mode<synchronous>, transform_indices = @transform_5, window_bounds = array<i64: 1, 16>}, {pipeline_mode = #tpu.pipeline_mode<synchronous>, transform_indices = @transform_6, window_bounds = array<i64: 1, 16>}, {pipeline_mode = #tpu.pipeline_mode<synchronous>, transform_indices = @transform_7, window_bounds = array<i64: 48, 16>}, {pipeline_mode = #tpu.pipeline_mode<synchronous>, transform_indices = @transform_8, window_bounds = array<i64: 1, 16>}, {pipeline_mode = #tpu.pipeline_mode<synchronous>, transform_indices = @transform_9, window_bounds = array<i64: 48, 16>}, {pipeline_mode = #tpu.pipeline_mode<synchronous>, transform_indices = @transform_10, window_bounds = array<i64: 1, 16>}, {pipeline_mode = #tpu.pipeline_mode<synchronous>, transform_indices = @transform_11, window_bounds = array<i64: 16, 32>}, {pipeline_mode = #tpu.pipeline_mode<synchronous>, transform_indices = @transform_12, window_bounds = array<i64: 1, 32>}, {pipeline_mode = #tpu.pipeline_mode<synchronous>, transform_indices = @transform_13, window_bounds = array<i64: 32, 12>}, {pipeline_mode = #tpu.pipeline_mode<synchronous>, transform_indices = @transform_14, window_bounds = array<i64: 1, 12>}, {pipeline_mode = #tpu.pipeline_mode<synchronous>, transform_indices = @transform_15, window_bounds = array<i64: 8, 12>}]} {
    %0 = tpu.iota {dimensions = array<i32: 0>} : vector<128x1xi32>
    %c16_i32 = arith.constant 16 : i32
    %c0_i32 = arith.constant 0 : i32
    %1 = arith.cmpi eq, %c16_i32, %c0_i32 : i32
    %c1_i32 = arith.constant 1 : i32
    %2 = arith.select %1, %c1_i32, %c16_i32 : i32
    %3 = vector.broadcast %2 : i32 to vector<128x1xi32>
    %4 = arith.remsi %0, %3 : vector<128x1xi32>
    %c0_i32_0 = arith.constant 0 : i32
    %5 = vector.broadcast %c0_i32_0 : i32 to vector<128x1xi32>
    %6 = arith.cmpi ne, %4, %5 : vector<128x1xi32>
    %c0_i32_1 = arith.constant 0 : i32
    %7 = vector.broadcast %c0_i32_1 : i32 to vector<128x1xi32>
    %8 = arith.cmpi slt, %4, %7 : vector<128x1xi32>
    %c0_i32_2 = arith.constant 0 : i32
    %9 = arith.cmpi slt, %2, %c0_i32_2 : i32
    %10 = vector.broadcast %9 : i1 to vector<128x1xi1>
    %11 = vector.broadcast %10 : vector<128x1xi1> to vector<128x1xi1>
    %12 = arith.xori %8, %11 : vector<128x1xi1>
    %13 = arith.andi %12, %6 : vector<128x1xi1>
    %14 = vector.broadcast %2 : i32 to vector<128x1xi32>
    %15 = arith.addi %4, %14 : vector<128x1xi32>
    %16 = arith.select %13, %15, %4 : vector<128x1xi1>, vector<128x1xi32>
    %c0 = arith.constant 0 : index
    %c0_3 = arith.constant 0 : index
    %17 = vector.load %arg1[%c0, %c0_3] : memref<128x1xf32, #tpu.memory_space<vmem>>, vector<128x1xf32>
    %cst = arith.constant 0.000000e+00 : f32
    %18 = vector.broadcast %cst : f32 to vector<8x48xf32>
    %c0_4 = arith.constant 0 : index
    %c0_5 = arith.constant 0 : index
    %19 = vector.load %arg17[%c0_4, %c0_5] : memref<136x48xf32, #tpu.memory_space<vmem>>, vector<8x48xf32>
    tpu.vector_store %arg17[%c0_4, %c0_5], %18 {strides = array<i32>} : memref<136x48xf32, #tpu.memory_space<vmem>>, vector<8x48xf32>,
    %c14_i32 = arith.constant 14 : i32
    %20 = vector.broadcast %c14_i32 : i32 to vector<128x1xi32>
    %21 = arith.cmpi slt, %16, %20 : vector<128x1xi32>
    %cst_6 = arith.constant 0.000000e+00 : f32
    %22 = vector.broadcast %cst_6 : f32 to vector<128x1xf32>
    %23 = arith.select %21, %17, %22 : vector<128x1xi1>, vector<128x1xf32>
    %c2 = arith.constant 2 : index
    %c0_7 = arith.constant 0 : index
    %24 = vector.load %arg17[%c2, %c0_7] : memref<136x48xf32, #tpu.memory_space<vmem>>, vector<128x1xf32>
    tpu.vector_store %arg17[%c2, %c0_7], %23 {strides = array<i32>} : memref<136x48xf32, #tpu.memory_space<vmem>>, vector<128x1xf32>,
    %c15_i32 = arith.constant 15 : i32
    %25 = vector.broadcast %c15_i32 : i32 to vector<128x1xi32>
    %26 = arith.cmpi slt, %16, %25 : vector<128x1xi32>
    %cst_8 = arith.constant 0.000000e+00 : f32
    %27 = vector.broadcast %cst_8 : f32 to vector<128x1xf32>
    %28 = arith.select %26, %17, %27 : vector<128x1xi1>, vector<128x1xf32>
    %c1 = arith.constant 1 : index
    %c1_9 = arith.constant 1 : index
    %29 = vector.load %arg17[%c1, %c1_9] : memref<136x48xf32, #tpu.memory_space<vmem>>, vector<128x1xf32>
    tpu.vector_store %arg17[%c1, %c1_9], %28 {strides = array<i32>} : memref<136x48xf32, #tpu.memory_space<vmem>>, vector<128x1xf32>,
    %c0_10 = arith.constant 0 : index
    %c2_11 = arith.constant 2 : index
    %30 = vector.load %arg17[%c0_10, %c2_11] : memref<136x48xf32, #tpu.memory_space<vmem>>, vector<128x1xf32>
    tpu.vector_store %arg17[%c0_10, %c2_11], %17 {strides = array<i32>} : memref<136x48xf32, #tpu.memory_space<vmem>>, vector<128x1xf32>,
    %c0_12 = arith.constant 0 : index
    %c0_13 = arith.constant 0 : index
    %31 = vector.load %arg17[%c0_12, %c0_13] : memref<136x48xf32, #tpu.memory_space<vmem>>, vector<128x3xf32>
    %32 = arith.truncf %31 : vector<128x3xf32> to vector<128x3xbf16>
    %c0_14 = arith.constant 0 : index
    %c0_15 = arith.constant 0 : index
    %33 = vector.load %arg2[%c0_14, %c0_15] : memref<3x16xbf16, #tpu.memory_space<vmem>>, vector<3x16xbf16>
    %cst_16 = arith.constant dense<0.000000e+00> : vector<128x16xf32>
    %34 = tpu.matmul %32, %33, %cst_16 {dimension_numbers = #tpu.dot_dimension_numbers<[1], [0], [0], [1], [0, 0, 1, 1], [], []>} : vector<128x3xbf16>, vector<3x16xbf16>, vector<128x16xf32> -> vector<128x16xf32>
    %c0_17 = arith.constant 0 : index
    %c0_18 = arith.constant 0 : index
    %35 = vector.load %arg3[%c0_17, %c0_18] : memref<1x16xf32, #tpu.memory_space<vmem>>, vector<1x16xf32>
    %36 = vector.broadcast %35 : vector<1x16xf32> to vector<128x16xf32>
    %37 = arith.addf %34, %36 : vector<128x16xf32>
    %cst_19 = arith.constant 0.000000e+00 : f32
    %38 = vector.broadcast %cst_19 : f32 to vector<128x16xf32>
    %39 = arith.maximumf %37, %38 : vector<128x16xf32>
    %cst_20 = arith.constant 0.000000e+00 : f32
    %40 = vector.broadcast %cst_20 : f32 to vector<8x48xf32>
    %c0_21 = arith.constant 0 : index
    %c0_22 = arith.constant 0 : index
    %41 = vector.load %arg17[%c0_21, %c0_22] : memref<136x48xf32, #tpu.memory_space<vmem>>, vector<8x48xf32>
    tpu.vector_store %arg17[%c0_21, %c0_22], %40 {strides = array<i32>} : memref<136x48xf32, #tpu.memory_space<vmem>>, vector<8x48xf32>,
    %c14_i32_23 = arith.constant 14 : i32
    %42 = vector.broadcast %c14_i32_23 : i32 to vector<128x1xi32>
    %43 = arith.cmpi slt, %16, %42 : vector<128x1xi32>
    %cst_24 = arith.constant 0.000000e+00 : f32
    %44 = vector.shape_cast %43 : vector<128x1xi1> to vector<128x1xi1>
    %45 = vector.broadcast %44 : vector<128x1xi1> to vector<128x16xi1>
    %46 = vector.broadcast %cst_24 : f32 to vector<128x16xf32>
    %47 = arith.select %45, %39, %46 : vector<128x16xi1>, vector<128x16xf32>
    %c2_25 = arith.constant 2 : index
    %c0_26 = arith.constant 0 : index
    %48 = vector.load %arg17[%c2_25, %c0_26] : memref<136x48xf32, #tpu.memory_space<vmem>>, vector<128x16xf32>
    tpu.vector_store %arg17[%c2_25, %c0_26], %47 {strides = array<i32>} : memref<136x48xf32, #tpu.memory_space<vmem>>, vector<128x16xf32>,
    %c15_i32_27 = arith.constant 15 : i32
    %49 = vector.broadcast %c15_i32_27 : i32 to vector<128x1xi32>
    %50 = arith.cmpi slt, %16, %49 : vector<128x1xi32>
    %cst_28 = arith.constant 0.000000e+00 : f32
    %51 = vector.shape_cast %50 : vector<128x1xi1> to vector<128x1xi1>
    %52 = vector.broadcast %51 : vector<128x1xi1> to vector<128x16xi1>
    %53 = vector.broadcast %cst_28 : f32 to vector<128x16xf32>
    %54 = arith.select %52, %39, %53 : vector<128x16xi1>, vector<128x16xf32>
    %c1_29 = arith.constant 1 : index
    %c16 = arith.constant 16 : index
    %55 = vector.load %arg17[%c1_29, %c16] : memref<136x48xf32, #tpu.memory_space<vmem>>, vector<128x16xf32>
    tpu.vector_store %arg17[%c1_29, %c16], %54 {strides = array<i32>} : memref<136x48xf32, #tpu.memory_space<vmem>>, vector<128x16xf32>,
    %c0_30 = arith.constant 0 : index
    %c32 = arith.constant 32 : index
    %56 = vector.load %arg17[%c0_30, %c32] : memref<136x48xf32, #tpu.memory_space<vmem>>, vector<128x16xf32>
    tpu.vector_store %arg17[%c0_30, %c32], %39 {strides = array<i32>} : memref<136x48xf32, #tpu.memory_space<vmem>>, vector<128x16xf32>,
    %c0_31 = arith.constant 0 : index
    %c0_32 = arith.constant 0 : index
    %57 = vector.load %arg17[%c0_31, %c0_32] : memref<136x48xf32, #tpu.memory_space<vmem>>, vector<128x48xf32>
    %58 = arith.truncf %57 : vector<128x48xf32> to vector<128x48xbf16>
    %c0_33 = arith.constant 0 : index
    %c0_34 = arith.constant 0 : index
    %59 = vector.load %arg4[%c0_33, %c0_34] : memref<48x16xbf16, #tpu.memory_space<vmem>>, vector<48x16xbf16>
    %cst_35 = arith.constant dense<0.000000e+00> : vector<128x16xf32>
    %60 = tpu.matmul %58, %59, %cst_35 {dimension_numbers = #tpu.dot_dimension_numbers<[1], [0], [0], [1], [0, 0, 1, 1], [], []>} : vector<128x48xbf16>, vector<48x16xbf16>, vector<128x16xf32> -> vector<128x16xf32>
    %c0_36 = arith.constant 0 : index
    %c0_37 = arith.constant 0 : index
    %61 = vector.load %arg5[%c0_36, %c0_37] : memref<1x16xf32, #tpu.memory_space<vmem>>, vector<1x16xf32>
    %62 = vector.broadcast %61 : vector<1x16xf32> to vector<128x16xf32>
    %63 = arith.addf %60, %62 : vector<128x16xf32>
    %cst_38 = arith.constant 0.000000e+00 : f32
    %64 = vector.broadcast %cst_38 : f32 to vector<128x16xf32>
    %65 = arith.maximumf %63, %64 : vector<128x16xf32>
    %66 = arith.truncf %17 : vector<128x1xf32> to vector<128x1xbf16>
    %c0_39 = arith.constant 0 : index
    %c0_40 = arith.constant 0 : index
    %67 = vector.load %arg6[%c0_39, %c0_40] : memref<1x16xbf16, #tpu.memory_space<vmem>>, vector<1x16xbf16>
    %cst_41 = arith.constant dense<0.000000e+00> : vector<128x16xf32>
    %68 = tpu.matmul %66, %67, %cst_41 {dimension_numbers = #tpu.dot_dimension_numbers<[1], [0], [0], [1], [0, 0, 1, 1], [], []>} : vector<128x1xbf16>, vector<1x16xbf16>, vector<128x16xf32> -> vector<128x16xf32>
    %c0_42 = arith.constant 0 : index
    %c0_43 = arith.constant 0 : index
    %69 = vector.load %arg7[%c0_42, %c0_43] : memref<1x16xf32, #tpu.memory_space<vmem>>, vector<1x16xf32>
    %70 = vector.broadcast %69 : vector<1x16xf32> to vector<128x16xf32>
    %71 = arith.addf %68, %70 : vector<128x16xf32>
    %72 = arith.addf %65, %71 : vector<128x16xf32>
    %cst_44 = arith.constant 0.000000e+00 : f32
    %73 = vector.broadcast %cst_44 : f32 to vector<128x16xf32>
    %74 = arith.maximumf %72, %73 : vector<128x16xf32>
    %cst_45 = arith.constant 0.000000e+00 : f32
    %75 = vector.broadcast %cst_45 : f32 to vector<8x48xf32>
    %c0_46 = arith.constant 0 : index
    %c0_47 = arith.constant 0 : index
    %76 = vector.load %arg17[%c0_46, %c0_47] : memref<136x48xf32, #tpu.memory_space<vmem>>, vector<8x48xf32>
    tpu.vector_store %arg17[%c0_46, %c0_47], %75 {strides = array<i32>} : memref<136x48xf32, #tpu.memory_space<vmem>>, vector<8x48xf32>,
    %c12_i32 = arith.constant 12 : i32
    %77 = vector.broadcast %c12_i32 : i32 to vector<128x1xi32>
    %78 = arith.cmpi slt, %16, %77 : vector<128x1xi32>
    %cst_48 = arith.constant 0.000000e+00 : f32
    %79 = vector.shape_cast %78 : vector<128x1xi1> to vector<128x1xi1>
    %80 = vector.broadcast %79 : vector<128x1xi1> to vector<128x16xi1>
    %81 = vector.broadcast %cst_48 : f32 to vector<128x16xf32>
    %82 = arith.select %80, %74, %81 : vector<128x16xi1>, vector<128x16xf32>
    %c4 = arith.constant 4 : index
    %c0_49 = arith.constant 0 : index
    %83 = vector.load %arg17[%c4, %c0_49] : memref<136x48xf32, #tpu.memory_space<vmem>>, vector<128x16xf32>
    tpu.vector_store %arg17[%c4, %c0_49], %82 {strides = array<i32>} : memref<136x48xf32, #tpu.memory_space<vmem>>, vector<128x16xf32>,
    %c14_i32_50 = arith.constant 14 : i32
    %84 = vector.broadcast %c14_i32_50 : i32 to vector<128x1xi32>
    %85 = arith.cmpi slt, %16, %84 : vector<128x1xi32>
    %cst_51 = arith.constant 0.000000e+00 : f32
    %86 = vector.shape_cast %85 : vector<128x1xi1> to vector<128x1xi1>
    %87 = vector.broadcast %86 : vector<128x1xi1> to vector<128x16xi1>
    %88 = vector.broadcast %cst_51 : f32 to vector<128x16xf32>
    %89 = arith.select %87, %74, %88 : vector<128x16xi1>, vector<128x16xf32>
    %c2_52 = arith.constant 2 : index
    %c16_53 = arith.constant 16 : index
    %90 = vector.load %arg17[%c2_52, %c16_53] : memref<136x48xf32, #tpu.memory_space<vmem>>, vector<128x16xf32>
    tpu.vector_store %arg17[%c2_52, %c16_53], %89 {strides = array<i32>} : memref<136x48xf32, #tpu.memory_space<vmem>>, vector<128x16xf32>,
    %c0_54 = arith.constant 0 : index
    %c32_55 = arith.constant 32 : index
    %91 = vector.load %arg17[%c0_54, %c32_55] : memref<136x48xf32, #tpu.memory_space<vmem>>, vector<128x16xf32>
    tpu.vector_store %arg17[%c0_54, %c32_55], %74 {strides = array<i32>} : memref<136x48xf32, #tpu.memory_space<vmem>>, vector<128x16xf32>,
    %c0_56 = arith.constant 0 : index
    %c0_57 = arith.constant 0 : index
    %92 = vector.load %arg17[%c0_56, %c0_57] : memref<136x48xf32, #tpu.memory_space<vmem>>, vector<128x48xf32>
    %93 = arith.truncf %92 : vector<128x48xf32> to vector<128x48xbf16>
    %c0_58 = arith.constant 0 : index
    %c0_59 = arith.constant 0 : index
    %94 = vector.load %arg8[%c0_58, %c0_59] : memref<48x16xbf16, #tpu.memory_space<vmem>>, vector<48x16xbf16>
    %cst_60 = arith.constant dense<0.000000e+00> : vector<128x16xf32>
    %95 = tpu.matmul %93, %94, %cst_60 {dimension_numbers = #tpu.dot_dimension_numbers<[1], [0], [0], [1], [0, 0, 1, 1], [], []>} : vector<128x48xbf16>, vector<48x16xbf16>, vector<128x16xf32> -> vector<128x16xf32>
    %c0_61 = arith.constant 0 : index
    %c0_62 = arith.constant 0 : index
    %96 = vector.load %arg9[%c0_61, %c0_62] : memref<1x16xf32, #tpu.memory_space<vmem>>, vector<1x16xf32>
    %97 = vector.broadcast %96 : vector<1x16xf32> to vector<128x16xf32>
    %98 = arith.addf %95, %97 : vector<128x16xf32>
    %cst_63 = arith.constant 0.000000e+00 : f32
    %99 = vector.broadcast %cst_63 : f32 to vector<128x16xf32>
    %100 = arith.maximumf %98, %99 : vector<128x16xf32>
    %cst_64 = arith.constant 0.000000e+00 : f32
    %101 = vector.broadcast %cst_64 : f32 to vector<8x48xf32>
    %c0_65 = arith.constant 0 : index
    %c0_66 = arith.constant 0 : index
    %102 = vector.load %arg17[%c0_65, %c0_66] : memref<136x48xf32, #tpu.memory_space<vmem>>, vector<8x48xf32>
    tpu.vector_store %arg17[%c0_65, %c0_66], %101 {strides = array<i32>} : memref<136x48xf32, #tpu.memory_space<vmem>>, vector<8x48xf32>,
    %c12_i32_67 = arith.constant 12 : i32
    %103 = vector.broadcast %c12_i32_67 : i32 to vector<128x1xi32>
    %104 = arith.cmpi slt, %16, %103 : vector<128x1xi32>
    %cst_68 = arith.constant 0.000000e+00 : f32
    %105 = vector.shape_cast %104 : vector<128x1xi1> to vector<128x1xi1>
    %106 = vector.broadcast %105 : vector<128x1xi1> to vector<128x16xi1>
    %107 = vector.broadcast %cst_68 : f32 to vector<128x16xf32>
    %108 = arith.select %106, %100, %107 : vector<128x16xi1>, vector<128x16xf32>
    %c4_69 = arith.constant 4 : index
    %c0_70 = arith.constant 0 : index
    %109 = vector.load %arg17[%c4_69, %c0_70] : memref<136x48xf32, #tpu.memory_space<vmem>>, vector<128x16xf32>
    tpu.vector_store %arg17[%c4_69, %c0_70], %108 {strides = array<i32>} : memref<136x48xf32, #tpu.memory_space<vmem>>, vector<128x16xf32>,
    %c14_i32_71 = arith.constant 14 : i32
    %110 = vector.broadcast %c14_i32_71 : i32 to vector<128x1xi32>
    %111 = arith.cmpi slt, %16, %110 : vector<128x1xi32>
    %cst_72 = arith.constant 0.000000e+00 : f32
    %112 = vector.shape_cast %111 : vector<128x1xi1> to vector<128x1xi1>
    %113 = vector.broadcast %112 : vector<128x1xi1> to vector<128x16xi1>
    %114 = vector.broadcast %cst_72 : f32 to vector<128x16xf32>
    %115 = arith.select %113, %100, %114 : vector<128x16xi1>, vector<128x16xf32>
    %c2_73 = arith.constant 2 : index
    %c16_74 = arith.constant 16 : index
    %116 = vector.load %arg17[%c2_73, %c16_74] : memref<136x48xf32, #tpu.memory_space<vmem>>, vector<128x16xf32>
    tpu.vector_store %arg17[%c2_73, %c16_74], %115 {strides = array<i32>} : memref<136x48xf32, #tpu.memory_space<vmem>>, vector<128x16xf32>,
    %c0_75 = arith.constant 0 : index
    %c32_76 = arith.constant 32 : index
    %117 = vector.load %arg17[%c0_75, %c32_76] : memref<136x48xf32, #tpu.memory_space<vmem>>, vector<128x16xf32>
    tpu.vector_store %arg17[%c0_75, %c32_76], %100 {strides = array<i32>} : memref<136x48xf32, #tpu.memory_space<vmem>>, vector<128x16xf32>,
    %c0_77 = arith.constant 0 : index
    %c0_78 = arith.constant 0 : index
    %118 = vector.load %arg17[%c0_77, %c0_78] : memref<136x48xf32, #tpu.memory_space<vmem>>, vector<128x48xf32>
    %119 = arith.truncf %118 : vector<128x48xf32> to vector<128x48xbf16>
    %c0_79 = arith.constant 0 : index
    %c0_80 = arith.constant 0 : index
    %120 = vector.load %arg10[%c0_79, %c0_80] : memref<48x16xbf16, #tpu.memory_space<vmem>>, vector<48x16xbf16>
    %cst_81 = arith.constant dense<0.000000e+00> : vector<128x16xf32>
    %121 = tpu.matmul %119, %120, %cst_81 {dimension_numbers = #tpu.dot_dimension_numbers<[1], [0], [0], [1], [0, 0, 1, 1], [], []>} : vector<128x48xbf16>, vector<48x16xbf16>, vector<128x16xf32> -> vector<128x16xf32>
    %c0_82 = arith.constant 0 : index
    %c0_83 = arith.constant 0 : index
    %122 = vector.load %arg11[%c0_82, %c0_83] : memref<1x16xf32, #tpu.memory_space<vmem>>, vector<1x16xf32>
    %123 = vector.broadcast %122 : vector<1x16xf32> to vector<128x16xf32>
    %124 = arith.addf %121, %123 : vector<128x16xf32>
    %cst_84 = arith.constant 0.000000e+00 : f32
    %125 = vector.broadcast %cst_84 : f32 to vector<128x16xf32>
    %126 = arith.maximumf %124, %125 : vector<128x16xf32>
    %127 = arith.addf %126, %74 : vector<128x16xf32>
    %cst_85 = arith.constant 0.000000e+00 : f32
    %128 = vector.broadcast %cst_85 : f32 to vector<128x16xf32>
    %129 = arith.maximumf %127, %128 : vector<128x16xf32>
    %130 = tpu.iota {dimensions = array<i32: 1>} : vector<8x128xi32>
    %131 = tpu.iota {dimensions = array<i32: 0>} : vector<8x128xi32>
    %c16_i32_86 = arith.constant 16 : i32
    %132 = vector.broadcast %c16_i32_86 : i32 to vector<8x128xi32>
    %133 = arith.muli %131, %132 : vector<8x128xi32>
    %c15_i32_87 = arith.constant 15 : i32
    %134 = vector.broadcast %c15_i32_87 : i32 to vector<8x128xi32>
    %135 = arith.addi %133, %134 : vector<8x128xi32>
    %136 = arith.cmpi eq, %130, %135 : vector<8x128xi32>
    %137 = arith.extui %136 : vector<8x128xi1> to vector<8x128xi32>
    %138 = arith.sitofp %137 : vector<8x128xi32> to vector<8x128xf32>
    %cst_88 = arith.constant dense<0.000000e+00> : vector<8x16xf32>
    %139 = tpu.matmul %138, %129, %cst_88 {dimension_numbers = #tpu.dot_dimension_numbers<[1], [0], [0], [1], [0, 0, 1, 1], [], []>} : vector<8x128xf32>, vector<128x16xf32>, vector<8x16xf32> -> vector<8x16xf32>
    %140 = arith.truncf %139 : vector<8x16xf32> to vector<8x16xbf16>
    %c0_89 = arith.constant 0 : index
    %c0_90 = arith.constant 0 : index
    %141 = vector.load %arg12[%c0_89, %c0_90] : memref<16x32xbf16, #tpu.memory_space<vmem>>, vector<16x32xbf16>
    %cst_91 = arith.constant dense<0.000000e+00> : vector<8x32xf32>
    %142 = tpu.matmul %140, %141, %cst_91 {dimension_numbers = #tpu.dot_dimension_numbers<[1], [0], [0], [1], [0, 0, 1, 1], [], []>} : vector<8x16xbf16>, vector<16x32xbf16>, vector<8x32xf32> -> vector<8x32xf32>
    %c0_92 = arith.constant 0 : index
    %c0_93 = arith.constant 0 : index
    %143 = vector.load %arg13[%c0_92, %c0_93] : memref<1x32xf32, #tpu.memory_space<vmem>>, vector<1x32xf32>
    %144 = vector.broadcast %143 : vector<1x32xf32> to vector<8x32xf32>
    %145 = arith.addf %142, %144 : vector<8x32xf32>
    %cst_94 = arith.constant 0.000000e+00 : f32
    %146 = vector.broadcast %cst_94 : f32 to vector<8x32xf32>
    %147 = arith.maximumf %145, %146 : vector<8x32xf32>
    %148 = arith.truncf %147 : vector<8x32xf32> to vector<8x32xbf16>
    %c0_95 = arith.constant 0 : index
    %c0_96 = arith.constant 0 : index
    %149 = vector.load %arg14[%c0_95, %c0_96] : memref<32x12xbf16, #tpu.memory_space<vmem>>, vector<32x12xbf16>
    %cst_97 = arith.constant dense<0.000000e+00> : vector<8x12xf32>
    %150 = tpu.matmul %148, %149, %cst_97 {dimension_numbers = #tpu.dot_dimension_numbers<[1], [0], [0], [1], [0, 0, 1, 1], [], []>} : vector<8x32xbf16>, vector<32x12xbf16>, vector<8x12xf32> -> vector<8x12xf32>
    %c0_98 = arith.constant 0 : index
    %c0_99 = arith.constant 0 : index
    %151 = vector.load %arg15[%c0_98, %c0_99] : memref<1x12xf32, #tpu.memory_space<vmem>>, vector<1x12xf32>
    %152 = vector.broadcast %151 : vector<1x12xf32> to vector<8x12xf32>
    %153 = arith.addf %150, %152 : vector<8x12xf32>
    %c0_100 = arith.constant 0 : index
    %c0_101 = arith.constant 0 : index
    %154 = vector.load %arg16[%c0_100, %c0_101] : memref<8x12xf32, #tpu.memory_space<vmem>>, vector<8x12xf32>
    tpu.vector_store %arg16[%c0_100, %c0_101], %153 {strides = array<i32>} : memref<8x12xf32, #tpu.memory_space<vmem>>, vector<8x12xf32>,
    return
  }
  func.func @transform_0(%arg0: i32) -> (i32, i32) {
    %c0_i32 = arith.constant 0 : i32
    %c0_i32_0 = arith.constant 0 : i32
    %c0_i32_1 = arith.constant 0 : i32
    return %c0_i32, %c0_i32_0 : i32, i32
  }
  func.func @transform_1(%arg0: i32) -> (i32, i32) {
    %c0_i32 = arith.constant 0 : i32
    %c0_i32_0 = arith.constant 0 : i32
    %c0_i32_1 = arith.constant 0 : i32
    return %c0_i32, %c0_i32_0 : i32, i32
  }
  func.func @transform_2(%arg0: i32) -> (i32, i32) {
    %c0_i32 = arith.constant 0 : i32
    %c0_i32_0 = arith.constant 0 : i32
    %c0_i32_1 = arith.constant 0 : i32
    return %c0_i32, %c0_i32_0 : i32, i32
  }
  func.func @transform_3(%arg0: i32) -> (i32, i32) {
    %c0_i32 = arith.constant 0 : i32
    %c0_i32_0 = arith.constant 0 : i32
    %c0_i32_1 = arith.constant 0 : i32
    return %c0_i32, %c0_i32_0 : i32, i32
  }
  func.func @transform_4(%arg0: i32) -> (i32, i32) {
    %c0_i32 = arith.constant 0 : i32
    %c0_i32_0 = arith.constant 0 : i32
    %c0_i32_1 = arith.constant 0 : i32
    return %c0_i32, %c0_i32_0 : i32, i32
  }
  func.func @transform_5(%arg0: i32) -> (i32, i32) {
    %c0_i32 = arith.constant 0 : i32
    %c0_i32_0 = arith.constant 0 : i32
    %c0_i32_1 = arith.constant 0 : i32
    return %c0_i32, %c0_i32_0 : i32, i32
  }
  func.func @transform_6(%arg0: i32) -> (i32, i32) {
    %c0_i32 = arith.constant 0 : i32
    %c0_i32_0 = arith.constant 0 : i32
    %c0_i32_1 = arith.constant 0 : i32
    return %c0_i32, %c0_i32_0 : i32, i32
  }
  func.func @transform_7(%arg0: i32) -> (i32, i32) {
    %c0_i32 = arith.constant 0 : i32
    %c0_i32_0 = arith.constant 0 : i32
    %c0_i32_1 = arith.constant 0 : i32
    return %c0_i32, %c0_i32_0 : i32, i32
  }
  func.func @transform_8(%arg0: i32) -> (i32, i32) {
    %c0_i32 = arith.constant 0 : i32
    %c0_i32_0 = arith.constant 0 : i32
    %c0_i32_1 = arith.constant 0 : i32
    return %c0_i32, %c0_i32_0 : i32, i32
  }
  func.func @transform_9(%arg0: i32) -> (i32, i32) {
    %c0_i32 = arith.constant 0 : i32
    %c0_i32_0 = arith.constant 0 : i32
    %c0_i32_1 = arith.constant 0 : i32
    return %c0_i32, %c0_i32_0 : i32, i32
  }
  func.func @transform_10(%arg0: i32) -> (i32, i32) {
    %c0_i32 = arith.constant 0 : i32
    %c0_i32_0 = arith.constant 0 : i32
    %c0_i32_1 = arith.constant 0 : i32
    return %c0_i32, %c0_i32_0 : i32, i32
  }
  func.func @transform_11(%arg0: i32) -> (i32, i32) {
    %c0_i32 = arith.constant 0 : i32
    %c0_i32_0 = arith.constant 0 : i32
    %c0_i32_1 = arith.constant 0 : i32
    return %c0_i32, %c0_i32_0 : i32, i32
  }
  func.func @transform_12(%arg0: i32) -> (i32, i32) {
    %c0_i32 = arith.constant 0 : i32
    %c0_i32_0 = arith.constant 0 : i32
    %c0_i32_1 = arith.constant 0 : i32
    return %c0_i32, %c0_i32_0 : i32, i32
  }
  func.func @transform_13(%arg0: i32) -> (i32, i32) {
    %c0_i32 = arith.constant 0 : i32
    %c0_i32_0 = arith.constant 0 : i32
    %c0_i32_1 = arith.constant 0 : i32
    return %c0_i32, %c0_i32_0 : i32, i32
  }
  func.func @transform_14(%arg0: i32) -> (i32, i32) {
    %c0_i32 = arith.constant 0 : i32
    %c0_i32_0 = arith.constant 0 : i32
    %c0_i32_1 = arith.constant 0 : i32
    return %c0_i32, %c0_i32_0 : i32, i32
  }
  func.func @transform_15(%arg0: i32) -> (i32, i32) {
    %c0_i32 = arith.constant 0 : i32
    %c0_i32_0 = arith.constant 0 : i32
    %c0_i32_1 = arith.constant 0 : i32
    return %c0_i32, %c0_i32_0 : i32, i32
  }
}

</mosaic_0001>

<bundles_post_ra>
// kernel: _lambda_.1
= control target key start
LH: loop header
LB: loop body
LE: loop exit
PB: predicated region body
PF: predicated region fallthrough
CT: control target
= control target key end

     0   :  { %v52_v2 = vlaneseq  ;;  %vm311_vm0 = vcmask 7168   ;;  %s2802_s22 = smov 1   ;;  %vm277_vm1 = vcmask 392192   ;;  %v2803_v9 = vmov 0.0   ;;  %s2804_s20 = smov 2   ;;  %s3901_s0 = inlined_call_operand.vmem [shape: f32[128,1], index: 0, kind: input, shape index: {}]   ;;  %s3902_s1 = inlined_call_operand.vmem [shape: bf16[3,16], index: 1, kind: input, shape index: {}]   ;;  %s3903_s2 = inlined_call_operand.vmem [shape: f32[1,16], index: 2, kind: input, shape index: {}]   ;;  %s3904_s3 = inlined_call_operand.vmem [shape: bf16[48,16], index: 3, kind: input, shape index: {}]   ;;  %s3905_s4 = inlined_call_operand.vmem [shape: f32[1,16], index: 4, kind: input, shape index: {}]   ;;  %s3906_s5 = inlined_call_operand.vmem [shape: bf16[1,16], index: 5, kind: input, shape index: {}]   ;;  %s3907_s6 = inlined_call_operand.vmem [shape: f32[1,16], index: 6, kind: input, shape index: {}]   ;;  %s3908_s7 = inlined_call_operand.vmem [shape: bf16[48,16], index: 7, kind: input, shape index: {}]   ;;  %s3909_s8 = inlined_call_operand.vmem [shape: f32[1,16], index: 8, kind: input, shape index: {}]   ;;  %s3910_s9 = inlined_call_operand.vmem [shape: bf16[48,16], index: 9, kind: input, shape index: {}]   ;;  %s3911_s10 = inlined_call_operand.vmem [shape: f32[1,16], index: 10, kind: input, shape index: {}]   ;;  %s3912_s11 = inlined_call_operand.vmem [shape: bf16[16,32], index: 11, kind: input, shape index: {}]   ;;  %s3913_s12 = inlined_call_operand.vmem [shape: f32[1,32], index: 12, kind: input, shape index: {}]   ;;  %s3914_s13 = inlined_call_operand.vmem [shape: bf16[32,12], index: 13, kind: input, shape index: {}]   ;;  %s3915_s14 = inlined_call_operand.vmem [shape: f32[1,12], index: 14, kind: input, shape index: {}]   ;;  %s3916_s15 = inlined_call_operand.hbm [shape: f32[8,12], index: 15, kind: output, shape index: {}]  }
   0x1   :  { %v2896_v0 = vld [vmem:[%s3901_s0 + $0x10] sm:$0xff]  ;;  %v2901_v1 = vld [vmem:[%s3901_s0] sm:$0xff]  ;;  %v2910_v3 = vld [vmem:[%s3901_s0 + $0x18] sm:$0xff]  ;;  %278 = vst.msk [vmem:[#allocation2] sm:$0xff] %vm277_vm1, %v2803_v9  ;;  %vm579_vm4 = vcmask 1040384   ;;  %vm580_vm9 = vcmask 1041408  }
   0x2   :  { %380 = vrot.lane.b32.xlu1 %v2896_v0, %s2802_s22  ;;  %376 = vrot.lane.b32.xlu0 %v2901_v1, %s2802_s22  ;;  %314 = vst.msk [vmem:[#allocation2 + $0x12] sm:$0xff] %vm311_vm0, %v2896_v0  ;;  %v2917_v4 = vld [vmem:[%s3901_s0 + $0x8] sm:$0xff]  ;;  %v2920_v5 = vshrl.u32 %v52_v2, 7  ;;  %v1168_v6 = vpack.c.bf16 %v2910_v3, %v2896_v0  ;;  %v2927_v7 = vld [vmem:[%s3901_s0 + $0x20] sm:$0xff]  ;;  %312 = vst.msk [vmem:[#allocation2 + $0x2] sm:$0xff] %vm311_vm0, %v2901_v1  ;;  %v2805_v29 = vmov 65535  }
   0x3   :  { %v2932_v8 = vld [vmem:[%s3901_s0 + $0x30] sm:$0xff]  ;;  %v2939_v10 = vld [vmem:[%s3901_s0 + $0x40] sm:$0xff]  ;;  %316 = vst.msk [vmem:[#allocation2 + $0x22] sm:$0xff] %vm311_vm0, %v2927_v7  ;;  %v2998_v24 = vld [vmem:[%s3901_s0 + $0x28] sm:$0xff]  ;;  %v581_v30 = vsel %vm579_vm4, 4294967295, %v2805_v29 }
   0x4   :  { %318 = vst.msk [vmem:[#allocation2 + $0x32] sm:$0xff] %vm311_vm0, %v2932_v8  ;;  %v56_v11 = vadd.s32 24, %v2920_v5  ;;  %v54_v12 = vadd.s32 8, %v2920_v5  ;;  %v58_v13 = vadd.s32 40, %v2920_v5  ;;  %v2953_v14 = vld [vmem:[%s3901_s0 + $0x50] sm:$0xff]  ;;  %320 = vst.msk [vmem:[#allocation2 + $0x42] sm:$0xff] %vm311_vm0, %v2939_v10 }
   0x5   :  { %v2964_v15 = vld [vmem:[%s3901_s0 + $0x60] sm:$0xff]  ;;  %322 = vst.msk [vmem:[#allocation2 + $0x52] sm:$0xff] %vm311_vm0, %v2953_v14  ;;  %v2975_v18 = vld [vmem:[%s3901_s0 + $0x70] sm:$0xff]  ;;  %v60_v19 = vadd.s32 56, %v2920_v5  ;;  %v62_v21 = vadd.s32 72, %v2920_v5  ;;  %v64_v27 = vadd.s32 88, %v2920_v5 }
   0x6   :  { %459 = vrot.lane.b32.xlu1 %v2917_v4, %s2804_s20  ;;  %457 = vrot.lane.b32.xlu0 %v2901_v1, %s2804_s20  ;;  %v2968_v16 = vand.u32 15, %v56_v11  ;;  %v2970_v17 = vand.u32 15, %v54_v12  ;;  %324 = vst.msk [vmem:[#allocation2 + $0x62] sm:$0xff] %vm311_vm0, %v2964_v15  ;;  %326 = vst.msk [vmem:[#allocation2 + $0x72] sm:$0xff] %vm311_vm0, %v2975_v18  ;;  %v2984_v20 = vand.u32 15, %v58_v13  ;;  %v3012_v28 = vld [vmem:[%s3901_s0 + $0x38] sm:$0xff] }
   0x7   :  { %v3000_v25 = vand.u32 15, %v60_v19  ;;  %v3004_v26 = vand.u32 15, %v62_v21  ;;  %v546_v31 = vld [vmem:[%s3902_s1] sm:$0x3]  ;;  %v3031_v33 = vld [vmem:[%s3901_s0 + $0x48] sm:$0xff]  ;;  %v3036_v35 = vand.u32 15, %v64_v27 }
   0x8   :  { %vm331_vm2 = vcmp.lt.s32.totalorder %v2968_v16, 15  ;;  %vm329_vm3 = vcmp.lt.s32.totalorder %v2970_v17, 15  ;;  %vm280_vm5 = vcmp.lt.s32.totalorder %v2970_v17, 14  ;;  %vm333_vm6 = vcmp.lt.s32.totalorder %v2984_v20, 15  ;;  %v3066_v43 = vld [vmem:[%s3901_s0 + $0x58] sm:$0xff] }
   0x9   :  { %v347_v22 = vsel %vm331_vm2, %v2910_v3, 0.0  ;;  %v345_v23 = vsel %vm329_vm3, %v2917_v4, 0.0  ;;  %vm282_vm7 = vcmp.lt.s32.totalorder %v2968_v16, 14  ;;  %vm284_vm8 = vcmp.lt.s32.totalorder %v2984_v20, 14 }
   0xa   :  { %382 = vrot.lane.b32.xlu1 %v347_v22, %s2802_s22  ;;  %378 = vrot.lane.b32.xlu0 %v345_v23, %s2802_s22  ;;  %vm286_vm10 = vcmp.lt.s32.totalorder %v3000_v25, 14  ;;  %vm3925_vm11 = vcmp.lt.s32.totalorder %v3004_v26, 14  ;;  %v349_v32 = vsel %vm333_vm6, %v2998_v24, 0.0  ;;  %vm335_vm12 = vcmp.lt.s32.totalorder %v3000_v25, 15 }
   0xb   :  { %v296_v34 = vsel %vm280_vm5, %v2917_v4, 0.0  ;;  %v298_v36 = vsel %vm282_vm7, %v2910_v3, 0.0  ;;  %v300_v37 = vsel %vm284_vm8, %v2998_v24, 0.0  ;;  %v582_v38 = vsel %vm580_vm9, %v581_v30, 0 }
   0xc   :  { %313 = vst.msk [vmem:[#allocation2 + $0xa] sm:$0xff] %vm311_vm0, %v296_v34  ;;  %315 = vst.msk [vmem:[#allocation2 + $0x1a] sm:$0xff] %vm311_vm0, %v298_v36  ;;  %v584_v39 = vand.u32 %v582_v38, %v546_v31  ;;  %v302_v40 = vsel %vm286_vm10, %v3012_v28, 0.0  ;;  %v304_v41 = vsel %vm3925_vm11, %v3031_v33, 0.0  ;;  %v351_v42 = vsel %vm335_vm12, %v3012_v28, 0.0 }
   0xd   :  { %317 = vst.msk [vmem:[#allocation2 + $0x2a] sm:$0xff] %vm311_vm0, %v300_v37  ;;  %vm3923_vm13 = vcmp.lt.s32.totalorder %v3036_v35, 14  ;;  %319 = vst.msk [vmem:[#allocation2 + $0x3a] sm:$0xff] %vm311_vm0, %v302_v40 }
   0xe   :  { %463 = vrot.lane.b32.xlu1 %v2910_v3, %s2804_s20  ;;  %461 = vrot.lane.b32.xlu0 %v2896_v0, %s2804_s20  ;;  %321 = vst.msk [vmem:[#allocation2 + $0x4a] sm:$0xff] %vm311_vm0, %v304_v41  ;;  %v306_v44 = vsel %vm3923_vm13, %v3066_v43, 0.0 }
   0xf   :  { %2580 = vmatprep.subr.bf16.mxu0 %v584_v39 }
  0x10   :  { %2581 = vmatpush3.bf16.msra.mxu0 %v584_v39 }
  0x12   :  { %386 = vrot.lane.b32.xlu1 %v349_v32, %s2802_s22  ;;  %384 = vrot.lane.b32.xlu0 %v2927_v7, %s2802_s22 }
  0x16   :  { %390 = vrot.lane.b32.xlu1 %v351_v42, %s2802_s22  ;;  %388 = vrot.lane.b32.xlu0 %v2932_v8, %s2802_s22 }
  0x17   :  { %20 = vsyncpa [#allocation4], 0  ;;  %v66_v45 = vadd.s32 104, %v2920_v5  ;;  %323 = vst.msk [vmem:[#allocation2 + $0x5a] sm:$0xff] %vm311_vm0, %v306_v44  ;;  %vm3917_vm14 = vcmp.lt.s32.totalorder %v3004_v26, 15  ;;  %v68_v47 = vadd.s32 120, %v2920_v5 }
  0x18   :  { %v353_v48 = vsel %vm3917_vm14, %v3031_v33, 0.0  ;;  %vm3922_vm9 = vcmp.lt.s32.totalorder %v3036_v35, 15  ;;  %v3096_v49 = vld [vmem:[%s3901_s0 + $0x68] sm:$0xff]  ;;  %v3117_v53 = vld [vmem:[%s3901_s0 + $0x78] sm:$0xff]  ;;  %s2808_s28 = smov 32   ;;  %s2812_s19 = smov [#allocation3]  }
  0x19   :  { %v3081_v46 = vand.u32 15, %v66_v45  ;;  %v3104_v51 = vand.u32 15, %v68_v47  ;;  %v355_v52 = vsel %vm3922_vm9, %v3066_v43, 0.0  ;;  %vm554_vm9 = vcmask 23552  }
  0x1a   :  { %467 = vrot.lane.b32.xlu1 %v2998_v24, %s2804_s20  ;;  %465 = vrot.lane.b32.xlu0 %v2927_v7, %s2804_s20 }
  0x1b   :  { %vm3918_vm15 = vcmp.lt.s32.totalorder %v3081_v46, 14  ;;  %vm3919_vm14 = vcmp.lt.s32.totalorder %v3104_v51, 14 }
  0x1c   :  { %v308_v50 = vsel %vm3918_vm15, %v3096_v49, 0.0  ;;  %v310_v54 = vsel %vm3919_vm14, %v3117_v53, 0.0  ;;  %vm3920_vm15 = vcmp.lt.s32.totalorder %v3081_v46, 15  ;;  %vm3921_vm14 = vcmp.lt.s32.totalorder %v3104_v51, 15 }
  0x1d   :  { %325 = vst.msk [vmem:[#allocation2 + $0x6a] sm:$0xff] %vm311_vm0, %v308_v50  ;;  %327 = vst.msk [vmem:[#allocation2 + $0x7a] sm:$0xff] %vm311_vm0, %v310_v54  ;;  %v357_v55 = vsel %vm3920_vm15, %v3096_v49, 0.0  ;;  %v359_v56 = vsel %vm3921_vm14, %v3117_v53, 0.0  ;;  %vm424_vm15 = vcmask 15368   ;;  %vm505_vm14 = vcmask 23568  }
  0x1e   :  { %471 = vrot.lane.b32.xlu1 %v3012_v28, %s2804_s20  ;;  %469 = vrot.lane.b32.xlu0 %v2932_v8, %s2804_s20 }
  0x22   :  { %394 = vrot.lane.b32.xlu1 %v353_v48, %s2802_s22  ;;  %392 = vrot.lane.b32.xlu0 %v2939_v10, %s2802_s22 }
  0x26   :  { %398 = vrot.lane.b32.xlu1 %v355_v52, %s2802_s22  ;;  %396 = vrot.lane.b32.xlu0 %v2953_v14, %s2802_s22 }
  0x2a   :  { %475 = vrot.lane.b32.xlu1 %v3031_v33, %s2804_s20  ;;  %473 = vrot.lane.b32.xlu0 %v2939_v10, %s2804_s20 }
  0x2e   :  { %479 = vrot.lane.b32.xlu1 %v3066_v43, %s2804_s20  ;;  %477 = vrot.lane.b32.xlu0 %v2953_v14, %s2804_s20 }
  0x32   :  { %402 = vrot.lane.b32.xlu1 %v357_v55, %s2802_s22  ;;  %400 = vrot.lane.b32.xlu0 %v2964_v15, %s2802_s22 }
  0x36   :  { %406 = vrot.lane.b32.xlu1 %v359_v56, %s2802_s22  ;;  %404 = vrot.lane.b32.xlu0 %v2975_v18, %s2802_s22 }
  0x3a   :  { %483 = vrot.lane.b32.xlu1 %v3096_v49, %s2804_s20  ;;  %481 = vrot.lane.b32.xlu0 %v2964_v15, %s2804_s20 }
  0x3e   :  { %487 = vrot.lane.b32.xlu1 %v3117_v53, %s2804_s20  ;;  %485 = vrot.lane.b32.xlu0 %v2975_v18, %s2804_s20 }
  0x74   :  { %v381_v57 = vpop.permute.xlu1 %380  ;;  %v377_v58 = vpop.permute.xlu0 %376 }
  0x75   :  { %427 = vst.msk [vmem:[#allocation2 + $0x11] sm:$0xff] %vm424_vm15, %v381_v57  ;;  %425 = vst.msk [vmem:[#allocation2 + $0x1] sm:$0xff] %vm424_vm15, %v377_v58 }
  0x78   :  { %v460_v59 = vpop.permute.xlu1 %459  ;;  %v458_v60 = vpop.permute.xlu0 %457 }
  0x79   :  { %506 = vst.msk [vmem:[#allocation2] sm:$0xff] %vm505_vm14, %v458_v60 }
  0x7c   :  { %v383_v61 = vpop.permute.xlu1 %382  ;;  %v379_v62 = vpop.permute.xlu0 %378 }
  0x7d   :  { %428 = vst.msk [vmem:[#allocation2 + $0x19] sm:$0xff] %vm424_vm15, %v383_v61  ;;  %426 = vst.msk [vmem:[#allocation2 + $0x9] sm:$0xff] %vm424_vm15, %v379_v62 }
  0x7e   :  { %507 = vst.msk [vmem:[#allocation2 + $0x8] sm:$0xff] %vm505_vm14, %v460_v59 }
  0x80   :  { %v522_v63 = vld [vmem:[#allocation2] sm:$0xff]  ;;  %v464_v11 = vpop.permute.xlu1 %463  ;;  %v462_v12 = vpop.permute.xlu0 %461 }
  0x81   :  { %699 = vst.msk [vmem:[#allocation2] sm:$0xff] %vm277_vm1, %v2803_v9 }
  0x82   :  { %509 = vst.msk [vmem:[#allocation2 + $0x18] sm:$0xff] %vm505_vm14, %v464_v11  ;;  %508 = vst.msk [vmem:[#allocation2 + $0x10] sm:$0xff] %vm505_vm14, %v462_v12 }
  0x84   :  { %v387_v13 = vpop.permute.xlu1 %386  ;;  %v385_v19 = vpop.permute.xlu0 %384 }
  0x85   :  { %430 = vst.msk [vmem:[#allocation2 + $0x29] sm:$0xff] %vm424_vm15, %v387_v13  ;;  %429 = vst.msk [vmem:[#allocation2 + $0x21] sm:$0xff] %vm424_vm15, %v385_v19  ;;  %v523_v21 = vld [vmem:[#allocation2 + $0x8] sm:$0xff] }
  0x86   :  { %v538_v22 = vpack.c.bf16 %v523_v21, %v522_v63 }
  0x88   :  { %v391_v23 = vpop.permute.xlu1 %390  ;;  %v389_v27 = vpop.permute.xlu0 %388  ;;  %2582 = vmatprep.mubr.msk.bf16.mxu0 %vm554_vm9, %v538_v22 }
  0x89   :  { %v524_v29 = vld [vmem:[#allocation2 + $0x10] sm:$0xff]  ;;  %v525_v30 = vld [vmem:[#allocation2 + $0x18] sm:$0xff]  ;;  %432 = vst.msk [vmem:[#allocation2 + $0x39] sm:$0xff] %vm424_vm15, %v391_v23  ;;  %431 = vst.msk [vmem:[#allocation2 + $0x31] sm:$0xff] %vm424_vm15, %v389_v27 }
  0x8a   :  { %v539_v31 = vpack.c.bf16 %v525_v30, %v524_v29 }
  0x8c   :  { %2583 = vmatmul.mubr.msk.bf16.vlgmr.msra.gmra.mrb[0].mxu0 %vm554_vm9, %v539_v31  ;;  %v468_v32 = vpop.permute.xlu1 %467  ;;  %v466_v34 = vpop.permute.xlu0 %465 }
  0x8d   :  { %511 = vst.msk [vmem:[#allocation2 + $0x28] sm:$0xff] %vm505_vm14, %v468_v32  ;;  %510 = vst.msk [vmem:[#allocation2 + $0x20] sm:$0xff] %vm505_vm14, %v466_v34 }
  0x90   :  { %v472_v36 = vpop.permute.xlu1 %471  ;;  %v470_v37 = vpop.permute.xlu0 %469 }
  0x91   :  { %513 = vst.msk [vmem:[#allocation2 + $0x38] sm:$0xff] %vm505_vm14, %v472_v36  ;;  %512 = vst.msk [vmem:[#allocation2 + $0x30] sm:$0xff] %vm505_vm14, %v470_v37  ;;  %v1175_v36 = vld [vmem:[%s3906_s5] sm:$0x1]  ;;  %v2806_v37 = vmov 0  }
  0x94   :  { %v395_v38 = vpop.permute.xlu1 %394  ;;  %v393_v39 = vpop.permute.xlu0 %392  ;;  %v526_v40 = vld [vmem:[#allocation2 + $0x20] sm:$0xff]  ;;  %v527_v41 = vld [vmem:[#allocation2 + $0x28] sm:$0xff] }
  0x95   :  { %434 = vst.msk [vmem:[#allocation2 + $0x49] sm:$0xff] %vm424_vm15, %v395_v38  ;;  %433 = vst.msk [vmem:[#allocation2 + $0x41] sm:$0xff] %vm424_vm15, %v393_v39  ;;  %v540_v42 = vpack.c.bf16 %v527_v41, %v526_v40  ;;  %v1208_v38 = vsel %vm579_vm4, 65535, %v2806_v37  ;;  %v3202_v40 = vld [vmem:[%s3903_s2] ss:$0 sm:$0xff]  ;;  %s2807_s2 = smov 16  }
  0x96   :  { %v1210_v39 = vand.u32 %v1208_v38, %v1175_v36  ;;  %v1170_v36 = vpack.c.bf16 %v3012_v28, %v2932_v8  ;;  %vm3928_vm4 = vcmp.lt.s32.totalorder %v3104_v51, 14 }
  0x97   :  { %2586 = vmatprep.mubr.msk.bf16.mxu0 %vm554_vm9, %v540_v42 }
  0x98   :  { %v399_v44 = vpop.permute.xlu1 %398  ;;  %v397_v45 = vpop.permute.xlu0 %396  ;;  %v528_v47 = vld [vmem:[#allocation2 + $0x30] sm:$0xff]  ;;  %v529_v48 = vld [vmem:[#allocation2 + $0x38] sm:$0xff]  ;;  %2620 = vmatprep.subr.bf16.mxu0 %v1210_v39 }
  0x99   :  { %436 = vst.msk [vmem:[#allocation2 + $0x59] sm:$0xff] %vm424_vm15, %v399_v44  ;;  %435 = vst.msk [vmem:[#allocation2 + $0x51] sm:$0xff] %vm424_vm15, %v397_v45  ;;  %v541_v50 = vpack.c.bf16 %v529_v48, %v528_v47  ;;  %2621 = vmatpush3.bf16.msra.mxu0 %v1210_v39 }
  0x9b   :  { %2587 = vmatmul.mubr.msk.bf16.gmra.mrb[4].mxu0 %vm554_vm9, %v541_v50 }
  0x9c   :  { %v476_v52 = vpop.permute.xlu1 %475  ;;  %v474_v54 = vpop.permute.xlu0 %473 }
  0x9d   :  { %515 = vst.msk [vmem:[#allocation2 + $0x48] sm:$0xff] %vm505_vm14, %v476_v52  ;;  %514 = vst.msk [vmem:[#allocation2 + $0x40] sm:$0xff] %vm505_vm14, %v474_v54 }
  0xa0   :  { %v480_v55 = vpop.permute.xlu1 %479  ;;  %v478_v56 = vpop.permute.xlu0 %477 }
  0xa1   :  { %517 = vst.msk [vmem:[#allocation2 + $0x58] sm:$0xff] %vm505_vm14, %v480_v55  ;;  %516 = vst.msk [vmem:[#allocation2 + $0x50] sm:$0xff] %vm505_vm14, %v478_v56  ;;  %v2766_v56 = vld [vmem:[%s3904_s3] sm:$0xff]  }
  0xa2   :  { %2598 = vmatprep.subr.bf16.mxu1 %v2766_v56 }
  0xa3   :  { %2599 = vmatpush3.bf16.msra.mxu1 %v2766_v56  ;;  %v1172_v56 = vpack.c.bf16 %v3066_v43, %v2953_v14 }
  0xa4   :  { %v403_v57 = vpop.permute.xlu1 %402  ;;  %v401_v58 = vpop.permute.xlu0 %400  ;;  %v530_v59 = vld [vmem:[#allocation2 + $0x40] sm:$0xff]  ;;  %v531_v60 = vld [vmem:[#allocation2 + $0x48] sm:$0xff] }
  0xa5   :  { %438 = vst.msk [vmem:[#allocation2 + $0x69] sm:$0xff] %vm424_vm15, %v403_v57  ;;  %437 = vst.msk [vmem:[#allocation2 + $0x61] sm:$0xff] %vm424_vm15, %v401_v58  ;;  %v542_v61 = vpack.c.bf16 %v531_v60, %v530_v59 }
  0xa7   :  { %2590 = vmatprep.mubr.msk.bf16.mxu0 %vm554_vm9, %v542_v61  ;;  %v2767_v61 = vld [vmem:[%s3904_s3 + $0x8] sm:$0xff]  }
  0xa8   :  { %v407_v62 = vpop.permute.xlu1 %406  ;;  %v405_v63 = vpop.permute.xlu0 %404  ;;  %v532_v11 = vld [vmem:[#allocation2 + $0x50] sm:$0xff]  ;;  %v533_v12 = vld [vmem:[#allocation2 + $0x58] sm:$0xff]  ;;  %2600 = vmatprep.subr.bf16.mxu1 %v2767_v61 }
  0xa9   :  { %440 = vst.msk [vmem:[#allocation2 + $0x79] sm:$0xff] %vm424_vm15, %v407_v62  ;;  %439 = vst.msk [vmem:[#allocation2 + $0x71] sm:$0xff] %vm424_vm15, %v405_v63  ;;  %v543_v13 = vpack.c.bf16 %v533_v12, %v532_v11  ;;  %2601 = vmatpush3.bf16.msra.mxu1 %v2767_v61  ;;  %v2768_v63 = vld [vmem:[%s3904_s3 + $0x10] sm:$0xff]   ;;  %v1167_v11 = vpack.c.bf16 %v2917_v4, %v2901_v1  ;;  %vm3931_vm15 = vcmp.lt.s32.totalorder %v3081_v46, 15 }
  0xaa   :  { %2602 = vmatprep.subr.bf16.mxu1 %v2768_v63 }
  0xab   :  { %2591 = vmatmul.mubr.msk.bf16.gmra.mrb[8].mxu0 %vm554_vm9, %v543_v13 }
  0xac   :  { %v484_v19 = vpop.permute.xlu1 %483  ;;  %v482_v21 = vpop.permute.xlu0 %481 }
  0xad   :  { %519 = vst.msk [vmem:[#allocation2 + $0x68] sm:$0xff] %vm505_vm14, %v484_v19  ;;  %518 = vst.msk [vmem:[#allocation2 + $0x60] sm:$0xff] %vm505_vm14, %v482_v21  ;;  %2603 = vmatpush3.bf16.msra.mxu1 %v2768_v63 }
  0xb0   :  { %v488_v22 = vpop.permute.xlu1 %487  ;;  %v486_v23 = vpop.permute.xlu0 %485 }
  0xb1   :  { %521 = vst.msk [vmem:[#allocation2 + $0x78] sm:$0xff] %vm505_vm14, %v488_v22  ;;  %520 = vst.msk [vmem:[#allocation2 + $0x70] sm:$0xff] %vm505_vm14, %v486_v23  ;;  %vm748_vm14 = vcmask 130048  }
  0xb4   :  { %v534_v27 = vld [vmem:[#allocation2 + $0x60] sm:$0xff]  ;;  %v535_v29 = vld [vmem:[#allocation2 + $0x68] sm:$0xff] }
  0xb5   :  { %v544_v30 = vpack.c.bf16 %v535_v29, %v534_v27 }
  0xb7   :  { %2594 = vmatprep.mubr.msk.bf16.mxu0 %vm554_vm9, %v544_v30 }
  0xb8   :  { %v536_v31 = vld [vmem:[#allocation2 + $0x70] sm:$0xff]  ;;  %v537_v32 = vld [vmem:[#allocation2 + $0x78] sm:$0xff] }
  0xb9   :  { %v545_v34 = vpack.c.bf16 %v537_v32, %v536_v31 }
  0xbb   :  { %2595 = vmatmul.mubr.msk.bf16.gmra.mrb[12].mxu0 %vm554_vm9, %v545_v34  ;;  %v1169_v34 = vpack.c.bf16 %v2998_v24, %v2927_v7  ;;  %vm877_vm9 = vcmask 261248  }
  0xbc   :  { %2622 = vmatprep.mubr.msk.bf16.mxu0 %vm311_vm0, %v1167_v11 }
  0xc3   :  { %2623 = vmatmul.mubr.msk.bf16.vlgmr.msra.gmra.mrb[16].mxu0 %vm311_vm0, %v1168_v6 }
  0xc4   :  { %2626 = vmatprep.mubr.msk.bf16.mxu0 %vm311_vm0, %v1169_v34 }
  0xcb   :  { %2627 = vmatmul.mubr.msk.bf16.gmra.mrb[20].mxu0 %vm311_vm0, %v1170_v36 }
 0x15f   :  { %v2584_v41 = vpop.f32.mrb[0].mxu0 }
 0x160   :  { %v629_v42 = vadd.f32 %v2584_v41, %v3202_v40  ;;  %v620_v44 = vpop.f32.mrb[1].mxu0 }
 0x161   :  { %v621_v45 = vadd.f32 %v3202_v40, %v620_v44  ;;  %v2585_v47 = vpop.f32.mrb[2].mxu0 }
 0x162   :  { %v685_v48 = vmax.f32 %v629_v42, 0.0  ;;  %v632_v50 = vadd.f32 %v2585_v47, %v3202_v40  ;;  %v623_v52 = vpop.f32.mrb[3].mxu0 }
 0x163   :  { %v683_v54 = vmax.f32 %v621_v45, 0.0  ;;  %v624_v55 = vadd.f32 %v3202_v40, %v623_v52 }
 0x164   :  { %v686_v57 = vmax.f32 %v632_v50, 0.0  ;;  %751 = vst.msk [vmem:[#allocation2 + $0x12] sm:$0xff] %vm748_vm14, %v685_v48  ;;  %833 = vrot.lane.b32.xlu0 %v685_v48, %s2807_s2 }
 0x165   :  { %749 = vst.msk [vmem:[#allocation2 + $0x2] sm:$0xff] %vm748_vm14, %v683_v54  ;;  %v684_v58 = vmax.f32 %v624_v55, 0.0  ;;  %v1171_v55 = vpack.c.bf16 %v3031_v33, %v2939_v10 }
 0x166   :  { %v735_v59 = vsel %vm282_vm7, %v686_v57, 0.0  ;;  %916 = vrot.lane.b32.xlu1 %v686_v57, %s2808_s28  ;;  %v800_v62 = vsel %vm331_vm2, %v686_v57, 0.0  ;;  %vm3926_vm2 = vcmp.lt.s32.totalorder %v3036_v35, 15 }
 0x167   :  { %752 = vst.msk [vmem:[#allocation2 + $0x1a] sm:$0xff] %vm748_vm14, %v735_v59  ;;  %v733_v60 = vsel %vm280_vm5, %v684_v58, 0.0  ;;  %v798_v1 = vsel %vm329_vm3, %v684_v58, 0.0  ;;  %2630 = vmatprep.mubr.msk.bf16.mxu0 %vm311_vm0, %v1171_v55  ;;  %vm3927_vm3 = vcmp.lt.s32.totalorder %v3004_v26, 15 }
 0x168   :  { %750 = vst.msk [vmem:[#allocation2 + $0xa] sm:$0xff] %vm748_vm14, %v733_v60  ;;  %914 = vrot.lane.b32.xlu0 %v685_v48, %s2808_s28  ;;  %2631 = vmatmul.mubr.msk.bf16.gmra.mrb[24].mxu0 %vm311_vm0, %v1172_v56 }
 0x16a   :  { %835 = vrot.lane.b32.xlu1 %v800_v62, %s2807_s2 }
 0x16c   :  { %829 = vrot.lane.b32.xlu0 %v683_v54, %s2807_s2 }
 0x16e   :  { %912 = vrot.lane.b32.xlu1 %v684_v58, %s2808_s28  ;;  %v2588_v12 = vpop.f32.mrb[4].mxu0 }
 0x16f   :  { %v645_v13 = vadd.f32 %v2588_v12, %v3202_v40  ;;  %v636_v19 = vpop.f32.mrb[5].mxu0 }
 0x170   :  { %910 = vrot.lane.b32.xlu0 %v683_v54, %s2808_s28  ;;  %v637_v21 = vadd.f32 %v3202_v40, %v636_v19  ;;  %v2589_v22 = vpop.f32.mrb[6].mxu0 }
 0x171   :  { %v689_v4 = vmax.f32 %v645_v13, 0.0  ;;  %v648_v23 = vadd.f32 %v2589_v22, %v3202_v40  ;;  %v639_v27 = vpop.f32.mrb[7].mxu0 }
 0x172   :  { %831 = vrot.lane.b32.xlu1 %v798_v1, %s2807_s2  ;;  %v687_v29 = vmax.f32 %v637_v21, 0.0  ;;  %v640_v30 = vadd.f32 %v3202_v40, %v639_v27  ;;  %v1174_v1 = vpack.c.bf16 %v3117_v53, %v2975_v18 }
 0x173   :  { %755 = vst.msk [vmem:[#allocation2 + $0x32] sm:$0xff] %vm748_vm14, %v689_v4  ;;  %v690_v0 = vmax.f32 %v648_v23, 0.0 }
 0x174   :  { %841 = vrot.lane.b32.xlu0 %v689_v4, %s2807_s2  ;;  %753 = vst.msk [vmem:[#allocation2 + $0x22] sm:$0xff] %vm748_vm14, %v687_v29  ;;  %v688_v3 = vmax.f32 %v640_v30, 0.0 }
 0x175   :  { %v739_v6 = vsel %vm286_vm10, %v690_v0, 0.0  ;;  %v804_v32 = vsel %vm335_vm12, %v690_v0, 0.0  ;;  %vm3930_vm12 = vcmp.lt.s32.totalorder %v3081_v46, 14 }
 0x176   :  { %924 = vrot.lane.b32.xlu1 %v690_v0, %s2808_s28  ;;  %756 = vst.msk [vmem:[#allocation2 + $0x3a] sm:$0xff] %vm748_vm14, %v739_v6  ;;  %v737_v31 = vsel %vm284_vm8, %v688_v3, 0.0  ;;  %v802_v7 = vsel %vm333_vm6, %v688_v3, 0.0  ;;  %vm3929_vm6 = vcmp.lt.s32.totalorder %v3104_v51, 15 }
 0x177   :  { %754 = vst.msk [vmem:[#allocation2 + $0x2a] sm:$0xff] %vm748_vm14, %v737_v31 }
 0x178   :  { %922 = vrot.lane.b32.xlu0 %v689_v4, %s2808_s28 }
 0x17a   :  { %843 = vrot.lane.b32.xlu1 %v804_v32, %s2807_s2 }
 0x17c   :  { %837 = vrot.lane.b32.xlu0 %v687_v29, %s2807_s2 }
 0x17e   :  { %920 = vrot.lane.b32.xlu1 %v688_v3, %s2808_s28  ;;  %v2592_v37 = vpop.f32.mrb[8].mxu0 }
 0x17f   :  { %v661_v38 = vadd.f32 %v2592_v37, %v3202_v40  ;;  %v652_v39 = vpop.f32.mrb[9].mxu0 }
 0x180   :  { %918 = vrot.lane.b32.xlu0 %v687_v29, %s2808_s28  ;;  %v653_v41 = vadd.f32 %v3202_v40, %v652_v39  ;;  %v2593_v42 = vpop.f32.mrb[10].mxu0 }
 0x181   :  { %v693_v24 = vmax.f32 %v661_v38, 0.0  ;;  %v664_v44 = vadd.f32 %v2593_v42, %v3202_v40  ;;  %v655_v8 = vpop.f32.mrb[11].mxu0 }
 0x182   :  { %839 = vrot.lane.b32.xlu1 %v802_v7, %s2807_s2  ;;  %v691_v28 = vmax.f32 %v653_v41, 0.0  ;;  %v656_v45 = vadd.f32 %v3202_v40, %v655_v8 }
 0x183   :  { %759 = vst.msk [vmem:[#allocation2 + $0x52] sm:$0xff] %vm748_vm14, %v693_v24  ;;  %v694_v47 = vmax.f32 %v664_v44, 0.0 }
 0x184   :  { %849 = vrot.lane.b32.xlu0 %v693_v24, %s2807_s2  ;;  %757 = vst.msk [vmem:[#allocation2 + $0x42] sm:$0xff] %vm748_vm14, %v691_v28  ;;  %v692_v48 = vmax.f32 %v656_v45, 0.0 }
 0x185   :  { %v743_v50 = vsel %vm3923_vm13, %v694_v47, 0.0  ;;  %v808_v54 = vsel %vm3926_vm2, %v694_v47, 0.0  ;;  %vm958_vm2 = vcmask 392448  }
 0x186   :  { %932 = vrot.lane.b32.xlu1 %v694_v47, %s2808_s28  ;;  %760 = vst.msk [vmem:[#allocation2 + $0x5a] sm:$0xff] %vm748_vm14, %v743_v50  ;;  %v741_v52 = vsel %vm3925_vm11, %v692_v48, 0.0  ;;  %v806_v10 = vsel %vm3927_vm3, %v692_v48, 0.0  ;;  %vm1343_vm3 = vcmp.lt.s32.totalorder %v2970_v17, 12 }
 0x187   :  { %758 = vst.msk [vmem:[#allocation2 + $0x4a] sm:$0xff] %vm748_vm14, %v741_v52 }
 0x188   :  { %930 = vrot.lane.b32.xlu0 %v693_v24, %s2808_s28 }
 0x18a   :  { %851 = vrot.lane.b32.xlu1 %v808_v54, %s2807_s2 }
 0x18c   :  { %845 = vrot.lane.b32.xlu0 %v691_v28, %s2807_s2 }
 0x18e   :  { %928 = vrot.lane.b32.xlu1 %v692_v48, %s2808_s28  ;;  %v2596_v57 = vpop.f32.mrb[12].mxu0 }
 0x18f   :  { %v677_v58 = vadd.f32 %v2596_v57, %v3202_v40  ;;  %v668_v59 = vpop.f32.mrb[13].mxu0 }
 0x190   :  { %926 = vrot.lane.b32.xlu0 %v691_v28, %s2808_s28  ;;  %v669_v60 = vadd.f32 %v3202_v40, %v668_v59  ;;  %v2597_v61 = vpop.f32.mrb[14].mxu0 }
 0x191   :  { %v697_v33 = vmax.f32 %v677_v58, 0.0  ;;  %v680_v62 = vadd.f32 %v2597_v61, %v3202_v40  ;;  %v671_v14 = vpop.f32.mrb[15].mxu0 }
 0x192   :  { %847 = vrot.lane.b32.xlu1 %v806_v10, %s2807_s2  ;;  %v695_v43 = vmax.f32 %v669_v60, 0.0  ;;  %v672_v63 = vadd.f32 %v3202_v40, %v671_v14  ;;  %v1173_v40 = vpack.c.bf16 %v3096_v49, %v2964_v15 }
 0x193   :  { %763 = vst.msk [vmem:[#allocation2 + $0x72] sm:$0xff] %vm748_vm14, %v697_v33  ;;  %v698_v11 = vmax.f32 %v680_v62, 0.0 }
 0x194   :  { %857 = vrot.lane.b32.xlu0 %v697_v33, %s2807_s2  ;;  %761 = vst.msk [vmem:[#allocation2 + $0x62] sm:$0xff] %vm748_vm14, %v695_v43  ;;  %v696_v12 = vmax.f32 %v672_v63, 0.0  ;;  %2634 = vmatprep.mubr.msk.bf16.mxu0 %vm311_vm0, %v1173_v40 }
 0x195   :  { %v747_v13 = vsel %vm3928_vm4, %v698_v11, 0.0  ;;  %v812_v19 = vsel %vm3929_vm6, %v698_v11, 0.0  ;;  %2635 = vmatmul.mubr.msk.bf16.gmra.mrb[28].mxu0 %vm311_vm0, %v1174_v1  ;;  %vm1345_vm0 = vcmp.lt.s32.totalorder %v2968_v16, 12  ;;  %vm1349_vm4 = vcmp.lt.s32.totalorder %v3000_v25, 12 }
 0x196   :  { %764 = vst.msk [vmem:[#allocation2 + $0x7a] sm:$0xff] %vm748_vm14, %v747_v13  ;;  %v745_v21 = vsel %vm3930_vm12, %v696_v12, 0.0  ;;  %859 = vrot.lane.b32.xlu1 %v812_v19, %s2807_s2  ;;  %v810_v22 = vsel %vm3931_vm15, %v696_v12, 0.0  ;;  %vm1347_vm6 = vcmp.lt.s32.totalorder %v2984_v20, 12  ;;  %vm1353_vm12 = vcmp.lt.s32.totalorder %v3036_v35, 12 }
 0x197   :  { %762 = vst.msk [vmem:[#allocation2 + $0x6a] sm:$0xff] %vm748_vm14, %v745_v21  ;;  %vm3924_vm15 = vcmp.lt.s32.totalorder %v3004_v26, 12 }
 0x198   :  { %853 = vrot.lane.b32.xlu0 %v695_v43, %s2807_s2 }
 0x19a   :  { %936 = vrot.lane.b32.xlu1 %v696_v12, %s2808_s28 }
 0x19c   :  { %934 = vrot.lane.b32.xlu0 %v695_v43, %s2808_s28 }
 0x19e   :  { %855 = vrot.lane.b32.xlu1 %v810_v22, %s2807_s2 }
 0x1a0   :  { %938 = vrot.lane.b32.xlu0 %v697_v33, %s2808_s28 }
 0x1a2   :  { %940 = vrot.lane.b32.xlu1 %v698_v11, %s2808_s28 }
 0x1d6   :  { %v834_v4 = vpop.permute.xlu0 %833 }
 0x1d7   :  { %880 = vst.msk [vmem:[#allocation2 + $0x11] sm:$0xff] %vm877_vm9, %v834_v4 }
 0x1d8   :  { %v917_v15 = vpop.permute.xlu1 %916 }
 0x1da   :  { %v915_v49 = vpop.permute.xlu0 %914 }
 0x1dc   :  { %v836_v23 = vpop.permute.xlu1 %835 }
 0x1dd   :  { %881 = vst.msk [vmem:[#allocation2 + $0x19] sm:$0xff] %vm877_vm9, %v836_v23  ;;  %v2624_v23 = vpop.f32.mrb[16].mxu0 }
 0x1de   :  { %962 = vst.msk [vmem:[#allocation2 + $0x18] sm:$0xff] %vm958_vm2, %v917_v15  ;;  %v830_v18 = vpop.permute.xlu0 %829 }
 0x1df   :  { %878 = vst.msk [vmem:[#allocation2 + $0x1] sm:$0xff] %vm877_vm9, %v830_v18  ;;  %v1246_v18 = vpop.f32.mrb[17].mxu0 }
 0x1e0   :  { %v913_v53 = vpop.permute.xlu1 %912 }
 0x1e2   :  { %v911_v27 = vpop.permute.xlu0 %910 }
 0x1e3   :  { %959 = vst.msk [vmem:[#allocation2] sm:$0xff] %vm958_vm2, %v911_v27 }
 0x1e4   :  { %v832_v29 = vpop.permute.xlu1 %831 }
 0x1e5   :  { %879 = vst.msk [vmem:[#allocation2 + $0x9] sm:$0xff] %vm877_vm9, %v832_v29  ;;  %v978_v36 = vld [vmem:[#allocation2 + $0x18] sm:$0xff] }
 0x1e6   :  { %960 = vst.msk [vmem:[#allocation2 + $0x8] sm:$0xff] %vm958_vm2, %v913_v53  ;;  %961 = vst.msk [vmem:[#allocation2 + $0x10] sm:$0xff] %vm958_vm2, %v915_v49  ;;  %v842_v30 = vpop.permute.xlu0 %841  ;;  %v2625_v53 = vpop.f32.mrb[18].mxu0 }
 0x1e7   :  { %884 = vst.msk [vmem:[#allocation2 + $0x31] sm:$0xff] %vm877_vm9, %v842_v30  ;;  %v1249_v27 = vpop.f32.mrb[19].mxu0 }
 0x1e8   :  { %v925_v0 = vpop.permute.xlu1 %924  ;;  %v2628_v29 = vpop.f32.mrb[20].mxu0 }
 0x1e9   :  { %v1262_v30 = vpop.f32.mrb[21].mxu0 }
 0x1ea   :  { %v923_v3 = vpop.permute.xlu0 %922  ;;  %v975_v6 = vld [vmem:[#allocation2] sm:$0xff] }
 0x1eb   :  { %1341 = vst.msk [vmem:[#allocation2] sm:$0xff] %vm277_vm1, %v2803_v9 }
 0x1ec   :  { %v844_v31 = vpop.permute.xlu1 %843 }
 0x1ed   :  { %885 = vst.msk [vmem:[#allocation2 + $0x39] sm:$0xff] %vm877_vm9, %v844_v31  ;;  %v976_v32 = vld [vmem:[#allocation2 + $0x8] sm:$0xff]  ;;  %v977_v34 = vld [vmem:[#allocation2 + $0x10] sm:$0xff] }
 0x1ee   :  { %966 = vst.msk [vmem:[#allocation2 + $0x38] sm:$0xff] %vm958_vm2, %v925_v0  ;;  %v838_v37 = vpop.permute.xlu0 %837  ;;  %v991_v38 = vpack.c.bf16 %v976_v32, %v975_v6  ;;  %v992_v39 = vpack.c.bf16 %v978_v36, %v977_v34  ;;  %v3376_v0 = vpop.f32.mrb[22].mxu0 }
 0x1ef   :  { %882 = vst.msk [vmem:[#allocation2 + $0x21] sm:$0xff] %vm877_vm9, %v838_v37 }
 0x1f0   :  { %v921_v41 = vpop.permute.xlu1 %920  ;;  %2604 = vmatprep.mubr.msk.bf16.mxu1 %vm277_vm1, %v991_v38 }
 0x1f1   :  { %2605 = vmatmul.mubr.msk.bf16.vlgmr.msra.gmra.mrb[0].mxu1 %vm277_vm1, %v992_v39 }
 0x1f2   :  { %v919_v42 = vpop.permute.xlu0 %918 }
 0x1f3   :  { %963 = vst.msk [vmem:[#allocation2 + $0x20] sm:$0xff] %vm958_vm2, %v919_v42  ;;  %v3402_v42 = vld [vmem:[%s3907_s6] ss:$0 sm:$0xff] }
 0x1f4   :  { %v840_v7 = vpop.permute.xlu1 %839 }
 0x1f5   :  { %883 = vst.msk [vmem:[#allocation2 + $0x29] sm:$0xff] %vm877_vm9, %v840_v7  ;;  %v982_v45 = vld [vmem:[#allocation2 + $0x38] sm:$0xff]  ;;  %v3407_v7 = vld [vmem:[%s3905_s4] ss:$0 sm:$0xff] }
 0x1f6   :  { %964 = vst.msk [vmem:[#allocation2 + $0x28] sm:$0xff] %vm958_vm2, %v921_v41  ;;  %965 = vst.msk [vmem:[#allocation2 + $0x30] sm:$0xff] %vm958_vm2, %v923_v3  ;;  %v850_v24 = vpop.permute.xlu0 %849  ;;  %v3378_v3 = vpop.f32.mrb[23].mxu0  ;;  %v2769_v41 = vld [vmem:[%s3908_s7] sm:$0xff]  }
 0x1f7   :  { %888 = vst.msk [vmem:[#allocation2 + $0x51] sm:$0xff] %vm877_vm9, %v850_v24  ;;  %2638 = vmatprep.subr.bf16.mxu1 %v2769_v41  ;;  %v2770_v24 = vld [vmem:[%s3908_s7 + $0x8] sm:$0xff]  }
 0x1f8   :  { %v933_v44 = vpop.permute.xlu1 %932  ;;  %2639 = vmatpush3.bf16.msra.mxu1 %v2769_v41 }
 0x1f9   :  { %2640 = vmatprep.subr.bf16.mxu1 %v2770_v24 }
 0x1fa   :  { %v931_v8 = vpop.permute.xlu0 %930  ;;  %v979_v47 = vld [vmem:[#allocation2 + $0x20] sm:$0xff] }
 0x1fc   :  { %v852_v28 = vpop.permute.xlu1 %851  ;;  %2641 = vmatpush3.bf16.msra.mxu1 %v2770_v24 }
 0x1fd   :  { %889 = vst.msk [vmem:[#allocation2 + $0x59] sm:$0xff] %vm877_vm9, %v852_v28  ;;  %v980_v48 = vld [vmem:[#allocation2 + $0x28] sm:$0xff]  ;;  %v981_v50 = vld [vmem:[#allocation2 + $0x30] sm:$0xff] }
 0x1fe   :  { %970 = vst.msk [vmem:[#allocation2 + $0x58] sm:$0xff] %vm958_vm2, %v933_v44  ;;  %v846_v52 = vpop.permute.xlu0 %845  ;;  %v993_v54 = vpack.c.bf16 %v980_v48, %v979_v47  ;;  %v994_v55 = vpack.c.bf16 %v982_v45, %v981_v50  ;;  %v1247_v47 = vadd.f32 %v3402_v42, %v1246_v18 }
 0x1ff   :  { %886 = vst.msk [vmem:[#allocation2 + $0x41] sm:$0xff] %vm877_vm9, %v846_v52 }
 0x200   :  { %v929_v56 = vpop.permute.xlu1 %928  ;;  %2608 = vmatprep.mubr.msk.bf16.mxu1 %vm277_vm1, %v993_v54 }
 0x201   :  { %2609 = vmatmul.mubr.msk.bf16.gmra.mrb[4].mxu1 %vm277_vm1, %v994_v55 }
 0x202   :  { %v927_v57 = vpop.permute.xlu0 %926 }
 0x203   :  { %967 = vst.msk [vmem:[#allocation2 + $0x40] sm:$0xff] %vm958_vm2, %v927_v57 }
 0x204   :  { %v848_v58 = vpop.permute.xlu1 %847 }
 0x205   :  { %887 = vst.msk [vmem:[#allocation2 + $0x49] sm:$0xff] %vm877_vm9, %v848_v58  ;;  %v986_v10 = vld [vmem:[#allocation2 + $0x58] sm:$0xff] }
 0x206   :  { %968 = vst.msk [vmem:[#allocation2 + $0x48] sm:$0xff] %vm958_vm2, %v929_v56  ;;  %969 = vst.msk [vmem:[#allocation2 + $0x50] sm:$0xff] %vm958_vm2, %v931_v8  ;;  %v858_v59 = vpop.permute.xlu0 %857  ;;  %v1255_v8 = vadd.f32 %v2624_v23, %v3402_v42 }
 0x207   :  { %892 = vst.msk [vmem:[#allocation2 + $0x71] sm:$0xff] %vm877_vm9, %v858_v59  ;;  %v1258_v59 = vadd.f32 %v2625_v53, %v3402_v42 }
 0x208   :  { %v860_v60 = vpop.permute.xlu1 %859 }
 0x209   :  { %893 = vst.msk [vmem:[#allocation2 + $0x79] sm:$0xff] %vm877_vm9, %v860_v60 }
 0x20a   :  { %v854_v61 = vpop.permute.xlu0 %853  ;;  %v983_v62 = vld [vmem:[#allocation2 + $0x40] sm:$0xff] }
 0x20b   :  { %890 = vst.msk [vmem:[#allocation2 + $0x61] sm:$0xff] %vm877_vm9, %v854_v61 }
 0x20c   :  { %v937_v33 = vpop.permute.xlu1 %936 }
 0x20d   :  { %v984_v14 = vld [vmem:[#allocation2 + $0x48] sm:$0xff]  ;;  %v985_v43 = vld [vmem:[#allocation2 + $0x50] sm:$0xff] }
 0x20e   :  { %v935_v63 = vpop.permute.xlu0 %934  ;;  %v995_v11 = vpack.c.bf16 %v984_v14, %v983_v62  ;;  %v996_v12 = vpack.c.bf16 %v986_v10, %v985_v43  ;;  %v1250_v10 = vadd.f32 %v3402_v42, %v1249_v27 }
 0x20f   :  { %971 = vst.msk [vmem:[#allocation2 + $0x60] sm:$0xff] %vm958_vm2, %v935_v63 }
 0x210   :  { %2612 = vmatprep.mubr.msk.bf16.mxu1 %vm277_vm1, %v995_v11  ;;  %v856_v13 = vpop.permute.xlu1 %855 }
 0x211   :  { %2613 = vmatmul.mubr.msk.bf16.gmra.mrb[8].mxu1 %vm277_vm1, %v996_v12  ;;  %891 = vst.msk [vmem:[#allocation2 + $0x69] sm:$0xff] %vm877_vm9, %v856_v13 }
 0x212   :  { %v939_v19 = vpop.permute.xlu0 %938  ;;  %972 = vst.msk [vmem:[#allocation2 + $0x68] sm:$0xff] %vm958_vm2, %v937_v33 }
 0x213   :  { %973 = vst.msk [vmem:[#allocation2 + $0x70] sm:$0xff] %vm958_vm2, %v939_v19 }
 0x214   :  { %v941_v21 = vpop.permute.xlu1 %940 }
 0x215   :  { %974 = vst.msk [vmem:[#allocation2 + $0x78] sm:$0xff] %vm958_vm2, %v941_v21 }
 0x216   :  { %v987_v40 = vld [vmem:[#allocation2 + $0x60] sm:$0xff] }
 0x219   :  { %v988_v22 = vld [vmem:[#allocation2 + $0x68] sm:$0xff] }
 0x21a   :  { %v997_v1 = vpack.c.bf16 %v988_v22, %v987_v40  ;;  %v989_v4 = vld [vmem:[#allocation2 + $0x70] sm:$0xff] }
 0x21b   :  { %v2771_v22 = vld [vmem:[%s3908_s7 + $0x10] sm:$0xff]  }
 0x21c   :  { %2616 = vmatprep.mubr.msk.bf16.mxu1 %vm277_vm1, %v997_v1  ;;  %v990_v15 = vld [vmem:[#allocation2 + $0x78] sm:$0xff]  ;;  %v1271_v1 = vadd.f32 %v2628_v29, %v3402_v42  ;;  %2642 = vmatprep.subr.bf16.mxu1 %v2771_v22 }
 0x21d   :  { %v998_v49 = vpack.c.bf16 %v990_v15, %v989_v4  ;;  %2643 = vmatpush3.bf16.msra.mxu1 %v2771_v22 }
 0x21f   :  { %2617 = vmatmul.mubr.msk.bf16.gmra.mrb[12].mxu1 %vm277_vm1, %v998_v49  ;;  %v1263_v49 = vadd.f32 %v3402_v42, %v1262_v30 }
 0x23b   :  { %v3380_v6 = vpop.f32.mrb[24].mxu0 }
 0x23c   :  { %v3382_v31 = vpop.f32.mrb[25].mxu0 }
 0x23d   :  { %v3384_v32 = vpop.f32.mrb[26].mxu0 }
 0x23e   :  { %v3386_v34 = vpop.f32.mrb[27].mxu0 }
 0x268   :  { %v3388_v36 = vpop.f32.mrb[28].mxu0 }
 0x269   :  { %v3390_v37 = vpop.f32.mrb[29].mxu0 }
 0x26a   :  { %v3392_v38 = vpop.f32.mrb[30].mxu0 }
 0x26b   :  { %v3394_v39 = vpop.f32.mrb[31].mxu0 }
 0x2c4   :  { %v2606_v44 = vpop.f32.mrb[0].mxu1 }
 0x2c5   :  { %v1097_v28 = vadd.f32 %v2606_v44, %v3407_v7  ;;  %v1088_v45 = vpop.f32.mrb[1].mxu1 }
 0x2c6   :  { %v1089_v48 = vadd.f32 %v3407_v7, %v1088_v45  ;;  %v2607_v50 = vpop.f32.mrb[2].mxu1  ;;  %v1266_v45 = vadd.f32 %v3402_v42, %v3378_v3 }
 0x2c7   :  { %v1153_v52 = vmax.f32 %v1097_v28, 0.0  ;;  %v1100_v54 = vadd.f32 %v2607_v50, %v3407_v7  ;;  %v1091_v55 = vpop.f32.mrb[3].mxu1 }
 0x2c8   :  { %v1151_v56 = vmax.f32 %v1089_v48, 0.0  ;;  %v1092_v57 = vadd.f32 %v3407_v7, %v1091_v55 }
 0x2c9   :  { %v1311_v58 = vadd.f32 %v1255_v8, %v1153_v52  ;;  %v1154_v60 = vmax.f32 %v1100_v54, 0.0  ;;  %v1274_v8 = vadd.f32 %v3376_v0, %v3402_v42 }
 0x2ca   :  { %v1309_v61 = vadd.f32 %v1247_v47, %v1151_v56  ;;  %v1152_v33 = vmax.f32 %v1092_v57, 0.0 }
 0x2cb   :  { %v3420_v62 = vmax.f32 %v1311_v58, 0.0  ;;  %v1312_v14 = vadd.f32 %v1258_v59, %v1154_v60  ;;  %v1287_v60 = vadd.f32 %v3380_v6, %v3402_v42 }
 0x2cc   :  { %v3423_v43 = vmax.f32 %v1309_v61, 0.0  ;;  %v1310_v63 = vadd.f32 %v1250_v10, %v1152_v33  ;;  %v1279_v33 = vadd.f32 %v3402_v42, %v3382_v31 }
 0x2cd   :  { %1408 = vst.msk [vmem:[#allocation2 + $0x14] sm:$0xff] %vm748_vm14, %v3420_v62  ;;  %v3428_v11 = vmax.f32 %v1312_v14, 0.0  ;;  %1458 = vrot.lane.b32.xlu0 %v3420_v62, %s2807_s2 }
 0x2ce   :  { %1406 = vst.msk [vmem:[#allocation2 + $0x4] sm:$0xff] %vm748_vm14, %v3423_v43  ;;  %v3434_v12 = vmax.f32 %v1310_v63, 0.0 }
 0x2cf   :  { %v1393_v13 = vsel %vm1345_vm0, %v3428_v11, 0.0  ;;  %1540 = vrot.lane.b32.xlu1 %v3428_v11, %s2808_s28  ;;  %v1425_v21 = vsel %vm282_vm7, %v3428_v11, 0.0 }
 0x2d0   :  { %1409 = vst.msk [vmem:[#allocation2 + $0x1c] sm:$0xff] %vm748_vm14, %v1393_v13  ;;  %v1391_v19 = vsel %vm1343_vm3, %v3434_v12, 0.0  ;;  %v1423_v48 = vsel %vm280_vm5, %v3434_v12, 0.0 }
 0x2d1   :  { %1407 = vst.msk [vmem:[#allocation2 + $0xc] sm:$0xff] %vm748_vm14, %v1391_v19  ;;  %1538 = vrot.lane.b32.xlu0 %v3420_v62, %s2808_s28 }
 0x2d3   :  { %1460 = vrot.lane.b32.xlu1 %v1425_v21, %s2807_s2 }
 0x2d4   :  { %v2610_v40 = vpop.f32.mrb[4].mxu1 }
 0x2d5   :  { %v1113_v4 = vadd.f32 %v2610_v40, %v3407_v7  ;;  %v1104_v15 = vpop.f32.mrb[5].mxu1  ;;  %1454 = vrot.lane.b32.xlu0 %v3423_v43, %s2807_s2 }
 0x2d6   :  { %v1105_v23 = vadd.f32 %v3407_v7, %v1104_v15  ;;  %v2611_v18 = vpop.f32.mrb[6].mxu1  ;;  %v1282_v15 = vadd.f32 %v3402_v42, %v3386_v34 }
 0x2d7   :  { %v1157_v53 = vmax.f32 %v1113_v4, 0.0  ;;  %v1116_v27 = vadd.f32 %v2611_v18, %v3407_v7  ;;  %v1107_v41 = vpop.f32.mrb[7].mxu1  ;;  %1536 = vrot.lane.b32.xlu1 %v3434_v12, %s2808_s28 }
 0x2d8   :  { %v1155_v29 = vmax.f32 %v1105_v23, 0.0  ;;  %v1108_v24 = vadd.f32 %v3407_v7, %v1107_v41 }
 0x2d9   :  { %v1315_v44 = vadd.f32 %v1271_v1, %v1157_v53  ;;  %v1158_v30 = vmax.f32 %v1116_v27, 0.0  ;;  %1534 = vrot.lane.b32.xlu0 %v3423_v43, %s2808_s28  ;;  %v1290_v1 = vadd.f32 %v3384_v32, %v3402_v42 }
 0x2da   :  { %v1313_v28 = vadd.f32 %v1263_v49, %v1155_v29  ;;  %v1156_v47 = vmax.f32 %v1108_v24, 0.0 }
 0x2db   :  { %v3474_v50 = vmax.f32 %v1315_v44, 0.0  ;;  %v1316_v52 = vadd.f32 %v1274_v8, %v1158_v30  ;;  %1456 = vrot.lane.b32.xlu1 %v1423_v48, %s2807_s2  ;;  %v1295_v48 = vadd.f32 %v3402_v42, %v3390_v37 }
 0x2dc   :  { %v3478_v0 = vmax.f32 %v1313_v28, 0.0  ;;  %v1314_v54 = vadd.f32 %v1266_v45, %v1156_v47  ;;  %v1303_v28 = vadd.f32 %v3388_v36, %v3402_v42 }
 0x2dd   :  { %1412 = vst.msk [vmem:[#allocation2 + $0x34] sm:$0xff] %vm748_vm14, %v3474_v50  ;;  %v3483_v3 = vmax.f32 %v1316_v52, 0.0  ;;  %1466 = vrot.lane.b32.xlu0 %v3474_v50, %s2807_s2 }
 0x2de   :  { %1410 = vst.msk [vmem:[#allocation2 + $0x24] sm:$0xff] %vm748_vm14, %v3478_v0  ;;  %v3489_v55 = vmax.f32 %v1314_v54, 0.0 }
 0x2df   :  { %v1397_v56 = vsel %vm1349_vm4, %v3483_v3, 0.0  ;;  %1548 = vrot.lane.b32.xlu1 %v3483_v3, %s2808_s28  ;;  %v1429_v58 = vsel %vm286_vm10, %v3483_v3, 0.0 }
 0x2e0   :  { %1413 = vst.msk [vmem:[#allocation2 + $0x3c] sm:$0xff] %vm748_vm14, %v1397_v56  ;;  %v1395_v57 = vsel %vm1347_vm6, %v3489_v55, 0.0  ;;  %v1427_v23 = vsel %vm284_vm8, %v3489_v55, 0.0 }
 0x2e1   :  { %1411 = vst.msk [vmem:[#allocation2 + $0x2c] sm:$0xff] %vm748_vm14, %v1395_v57  ;;  %1546 = vrot.lane.b32.xlu0 %v3474_v50, %s2808_s28  ;;  %v1306_v57 = vadd.f32 %v3392_v38, %v3402_v42 }
 0x2e3   :  { %1468 = vrot.lane.b32.xlu1 %v1429_v58, %s2807_s2 }
 0x2e4   :  { %v2614_v59 = vpop.f32.mrb[8].mxu1 }
 0x2e5   :  { %v1129_v61 = vadd.f32 %v2614_v59, %v3407_v7  ;;  %v1120_v10 = vpop.f32.mrb[9].mxu1  ;;  %1462 = vrot.lane.b32.xlu0 %v3478_v0, %s2807_s2 }
 0x2e6   :  { %v1121_v14 = vadd.f32 %v3407_v7, %v1120_v10  ;;  %v2615_v63 = vpop.f32.mrb[10].mxu1 }
 0x2e7   :  { %v1161_v13 = vmax.f32 %v1129_v61, 0.0  ;;  %v1132_v19 = vadd.f32 %v2615_v63, %v3407_v7  ;;  %v1123_v21 = vpop.f32.mrb[11].mxu1  ;;  %1544 = vrot.lane.b32.xlu1 %v3489_v55, %s2808_s28 }
 0x2e8   :  { %v1159_v6 = vmax.f32 %v1121_v14, 0.0  ;;  %v1124_v40 = vadd.f32 %v3407_v7, %v1123_v21 }
 0x2e9   :  { %v1319_v22 = vadd.f32 %v1287_v60, %v1161_v13  ;;  %v1162_v4 = vmax.f32 %v1132_v19, 0.0  ;;  %1542 = vrot.lane.b32.xlu0 %v3478_v0, %s2808_s28 }
 0x2ea   :  { %v1317_v31 = vadd.f32 %v1279_v33, %v1159_v6  ;;  %v1160_v49 = vmax.f32 %v1124_v40, 0.0  ;;  %v1298_v33 = vadd.f32 %v3402_v42, %v3394_v39 }
 0x2eb   :  { %v3528_v18 = vmax.f32 %v1319_v22, 0.0  ;;  %v1320_v53 = vadd.f32 %v1290_v1, %v1162_v4  ;;  %1464 = vrot.lane.b32.xlu1 %v1427_v23, %s2807_s2 }
 0x2ec   :  { %v3532_v32 = vmax.f32 %v1317_v31, 0.0  ;;  %v1318_v27 = vadd.f32 %v1282_v15, %v1160_v49 }
 0x2ed   :  { %1416 = vst.msk [vmem:[#allocation2 + $0x54] sm:$0xff] %vm748_vm14, %v3528_v18  ;;  %v3537_v34 = vmax.f32 %v1320_v53, 0.0  ;;  %1474 = vrot.lane.b32.xlu0 %v3528_v18, %s2807_s2 }
 0x2ee   :  { %1414 = vst.msk [vmem:[#allocation2 + $0x44] sm:$0xff] %vm748_vm14, %v3532_v32  ;;  %v3543_v41 = vmax.f32 %v1318_v27, 0.0 }
 0x2ef   :  { %v1401_v29 = vsel %vm1353_vm12, %v3537_v34, 0.0  ;;  %1556 = vrot.lane.b32.xlu1 %v3537_v34, %s2808_s28  ;;  %v1433_v44 = vsel %vm3923_vm13, %v3537_v34, 0.0  ;;  %vm1357_vm13 = vcmp.lt.s32.totalorder %v3104_v51, 12 }
 0x2f0   :  { %1417 = vst.msk [vmem:[#allocation2 + $0x5c] sm:$0xff] %vm748_vm14, %v1401_v29  ;;  %v1399_v24 = vsel %vm3924_vm15, %v3543_v41, 0.0  ;;  %vm1355_vm15 = vcmp.lt.s32.totalorder %v3081_v46, 12 }
 0x2f1   :  { %1415 = vst.msk [vmem:[#allocation2 + $0x4c] sm:$0xff] %vm748_vm14, %v1399_v24  ;;  %1554 = vrot.lane.b32.xlu0 %v3528_v18, %s2808_s28 }
 0x2f2   :  { %v2618_v8 = vpop.f32.mrb[12].mxu1 }
 0x2f3   :  { %1476 = vrot.lane.b32.xlu1 %v1433_v44, %s2807_s2  ;;  %v1145_v30 = vadd.f32 %v2618_v8, %v3407_v7  ;;  %v1136_v45 = vpop.f32.mrb[13].mxu1 }
 0x2f4   :  { %v1137_v47 = vadd.f32 %v3407_v7, %v1136_v45  ;;  %v2619_v52 = vpop.f32.mrb[14].mxu1 }
 0x2f5   :  { %1470 = vrot.lane.b32.xlu0 %v3532_v32, %s2807_s2  ;;  %v1165_v54 = vmax.f32 %v1145_v30, 0.0  ;;  %v1148_v56 = vadd.f32 %v2619_v52, %v3407_v7  ;;  %v1139_v58 = vpop.f32.mrb[15].mxu1 }
 0x2f6   :  { %v1163_v59 = vmax.f32 %v1137_v47, 0.0  ;;  %v1140_v36 = vadd.f32 %v3407_v7, %v1139_v58  ;;  %v1431_v7 = vsel %vm3925_vm11, %v3543_v41, 0.0  ;;  %vm3932_vm11 = vcmp.lt.s32.totalorder %v3104_v51, 14 }
 0x2f7   :  { %1552 = vrot.lane.b32.xlu1 %v3543_v41, %s2808_s28  ;;  %v1323_v60 = vadd.f32 %v1303_v28, %v1165_v54  ;;  %v1166_v61 = vmax.f32 %v1148_v56, 0.0 }
 0x2f8   :  { %v1321_v37 = vadd.f32 %v1295_v48, %v1163_v59  ;;  %v1164_v10 = vmax.f32 %v1140_v36, 0.0 }
 0x2f9   :  { %1550 = vrot.lane.b32.xlu0 %v3532_v32, %s2808_s28  ;;  %v3579_v14 = vmax.f32 %v1323_v60, 0.0  ;;  %v1324_v38 = vadd.f32 %v1306_v57, %v1166_v61 }
 0x2fa   :  { %v3585_v63 = vmax.f32 %v1321_v37, 0.0  ;;  %v1322_v13 = vadd.f32 %v1298_v33, %v1164_v10 }
 0x2fb   :  { %1472 = vrot.lane.b32.xlu1 %v1431_v7, %s2807_s2  ;;  %1420 = vst.msk [vmem:[#allocation2 + $0x74] sm:$0xff] %vm748_vm14, %v3579_v14  ;;  %v3591_v39 = vmax.f32 %v1324_v38, 0.0 }
 0x2fc   :  { %1418 = vst.msk [vmem:[#allocation2 + $0x64] sm:$0xff] %vm748_vm14, %v3585_v63  ;;  %v3595_v42 = vmax.f32 %v1322_v13, 0.0 }
 0x2fd   :  { %1482 = vrot.lane.b32.xlu0 %v3579_v14, %s2807_s2  ;;  %v1405_v19 = vsel %vm1357_vm13, %v3591_v39, 0.0  ;;  %v1437_v21 = vsel %vm3932_vm11, %v3591_v39, 0.0  ;;  %vm3933_vm11 = vcmp.lt.s32.totalorder %v3081_v46, 14 }
 0x2fe   :  { %1421 = vst.msk [vmem:[#allocation2 + $0x7c] sm:$0xff] %vm748_vm14, %v1405_v19  ;;  %v1403_v6 = vsel %vm1355_vm15, %v3595_v42, 0.0  ;;  %v1435_v40 = vsel %vm3933_vm11, %v3595_v42, 0.0 }
 0x2ff   :  { %1484 = vrot.lane.b32.xlu1 %v1437_v21, %s2807_s2  ;;  %1419 = vst.msk [vmem:[#allocation2 + $0x6c] sm:$0xff] %vm748_vm14, %v1403_v6 }
 0x301   :  { %1478 = vrot.lane.b32.xlu0 %v3585_v63, %s2807_s2 }
 0x303   :  { %1560 = vrot.lane.b32.xlu1 %v3595_v42, %s2808_s28 }
 0x305   :  { %1558 = vrot.lane.b32.xlu0 %v3585_v63, %s2808_s28 }
 0x307   :  { %1480 = vrot.lane.b32.xlu1 %v1435_v40, %s2807_s2 }
 0x309   :  { %1562 = vrot.lane.b32.xlu0 %v3579_v14, %s2808_s28 }
 0x30b   :  { %1564 = vrot.lane.b32.xlu1 %v3591_v39, %s2808_s28 }
 0x33f   :  { %v1459_v22 = vpop.permute.xlu0 %1458 }
 0x340   :  { %1504 = vst.msk [vmem:[#allocation2 + $0x12] sm:$0xff] %vm877_vm9, %v1459_v22 }
 0x341   :  { %v1541_v1 = vpop.permute.xlu1 %1540 }
 0x343   :  { %v1539_v4 = vpop.permute.xlu0 %1538 }
 0x345   :  { %v1461_v31 = vpop.permute.xlu1 %1460 }
 0x346   :  { %1505 = vst.msk [vmem:[#allocation2 + $0x1a] sm:$0xff] %vm877_vm9, %v1461_v31 }
 0x347   :  { %1585 = vst.msk [vmem:[#allocation2 + $0x18] sm:$0xff] %vm958_vm2, %v1541_v1  ;;  %v1455_v15 = vpop.permute.xlu0 %1454 }
 0x348   :  { %1502 = vst.msk [vmem:[#allocation2 + $0x2] sm:$0xff] %vm877_vm9, %v1455_v15 }
 0x349   :  { %v1537_v49 = vpop.permute.xlu1 %1536 }
 0x34b   :  { %v1535_v23 = vpop.permute.xlu0 %1534 }
 0x34c   :  { %1582 = vst.msk [vmem:[#allocation2] sm:$0xff] %vm958_vm2, %v1535_v23 }
 0x34d   :  { %v1457_v53 = vpop.permute.xlu1 %1456 }
 0x34e   :  { %1503 = vst.msk [vmem:[#allocation2 + $0xa] sm:$0xff] %vm877_vm9, %v1457_v53  ;;  %v1601_v45 = vld [vmem:[#allocation2 + $0x18] sm:$0xff] }
 0x34f   :  { %1583 = vst.msk [vmem:[#allocation2 + $0x8] sm:$0xff] %vm958_vm2, %v1537_v49  ;;  %1584 = vst.msk [vmem:[#allocation2 + $0x10] sm:$0xff] %vm958_vm2, %v1539_v4  ;;  %v1467_v27 = vpop.permute.xlu0 %1466 }
 0x350   :  { %1508 = vst.msk [vmem:[#allocation2 + $0x32] sm:$0xff] %vm877_vm9, %v1467_v27 }
 0x351   :  { %v1549_v29 = vpop.permute.xlu1 %1548 }
 0x353   :  { %v1598_v24 = vld [vmem:[#allocation2] sm:$0xff]  ;;  %v1547_v44 = vpop.permute.xlu0 %1546 }
 0x354   :  { %1790 = vst.msk [vmem:[#allocation2] sm:$0xff] %vm277_vm1, %v2803_v9 }
 0x355   :  { %v1469_v8 = vpop.permute.xlu1 %1468 }
 0x356   :  { %1509 = vst.msk [vmem:[#allocation2 + $0x3a] sm:$0xff] %vm877_vm9, %v1469_v8  ;;  %v1599_v30 = vld [vmem:[#allocation2 + $0x8] sm:$0xff]  ;;  %v1600_v28 = vld [vmem:[#allocation2 + $0x10] sm:$0xff] }
 0x357   :  { %1589 = vst.msk [vmem:[#allocation2 + $0x38] sm:$0xff] %vm958_vm2, %v1549_v29  ;;  %v1463_v47 = vpop.permute.xlu0 %1462  ;;  %v1614_v48 = vpack.c.bf16 %v1599_v30, %v1598_v24  ;;  %v1615_v52 = vpack.c.bf16 %v1601_v45, %v1600_v28 }
 0x358   :  { %1506 = vst.msk [vmem:[#allocation2 + $0x22] sm:$0xff] %vm877_vm9, %v1463_v47 }
 0x359   :  { %v1545_v54 = vpop.permute.xlu1 %1544  ;;  %2644 = vmatprep.mubr.msk.bf16.mxu1 %vm277_vm1, %v1614_v48 }
 0x35a   :  { %2645 = vmatmul.mubr.msk.bf16.vlgmr.msra.gmra.mrb[16].mxu1 %vm277_vm1, %v1615_v52 }
 0x35b   :  { %v1543_v56 = vpop.permute.xlu0 %1542 }
 0x35c   :  { %1586 = vst.msk [vmem:[#allocation2 + $0x20] sm:$0xff] %vm958_vm2, %v1543_v56 }
 0x35d   :  { %v1465_v57 = vpop.permute.xlu1 %1464 }
 0x35e   :  { %1507 = vst.msk [vmem:[#allocation2 + $0x2a] sm:$0xff] %vm877_vm9, %v1465_v57  ;;  %v1605_v61 = vld [vmem:[#allocation2 + $0x38] sm:$0xff] }
 0x35f   :  { %1587 = vst.msk [vmem:[#allocation2 + $0x28] sm:$0xff] %vm958_vm2, %v1545_v54  ;;  %1588 = vst.msk [vmem:[#allocation2 + $0x30] sm:$0xff] %vm958_vm2, %v1547_v44  ;;  %v1475_v58 = vpop.permute.xlu0 %1474  ;;  %v3670_v54 = vld [vmem:[%s3909_s8] ss:$0 sm:$0xff] }
 0x360   :  { %1512 = vst.msk [vmem:[#allocation2 + $0x52] sm:$0xff] %vm877_vm9, %v1475_v58 }
 0x361   :  { %v1557_v59 = vpop.permute.xlu1 %1556 }
 0x363   :  { %v1555_v36 = vpop.permute.xlu0 %1554  ;;  %v1602_v37 = vld [vmem:[#allocation2 + $0x20] sm:$0xff] }
 0x365   :  { %v1477_v60 = vpop.permute.xlu1 %1476 }
 0x366   :  { %1513 = vst.msk [vmem:[#allocation2 + $0x5a] sm:$0xff] %vm877_vm9, %v1477_v60  ;;  %v1603_v10 = vld [vmem:[#allocation2 + $0x28] sm:$0xff]  ;;  %v1604_v33 = vld [vmem:[#allocation2 + $0x30] sm:$0xff] }
 0x367   :  { %1593 = vst.msk [vmem:[#allocation2 + $0x58] sm:$0xff] %vm958_vm2, %v1557_v59  ;;  %v1471_v38 = vpop.permute.xlu0 %1470  ;;  %v1616_v7 = vpack.c.bf16 %v1603_v10, %v1602_v37  ;;  %v1617_v13 = vpack.c.bf16 %v1605_v61, %v1604_v33 }
 0x368   :  { %1510 = vst.msk [vmem:[#allocation2 + $0x42] sm:$0xff] %vm877_vm9, %v1471_v38  ;;  %v2772_v38 = vld [vmem:[%s3910_s9] sm:$0xff]  }
 0x369   :  { %v1553_v19 = vpop.permute.xlu1 %1552  ;;  %2648 = vmatprep.mubr.msk.bf16.mxu1 %vm277_vm1, %v1616_v7  ;;  %2660 = vmatprep.subr.bf16.mxu0 %v2772_v38 }
 0x36a   :  { %2649 = vmatmul.mubr.msk.bf16.gmra.mrb[20].mxu1 %vm277_vm1, %v1617_v13  ;;  %2661 = vmatpush3.bf16.msra.mxu0 %v2772_v38 }
 0x36b   :  { %v1551_v21 = vpop.permute.xlu0 %1550 }
 0x36c   :  { %1590 = vst.msk [vmem:[#allocation2 + $0x40] sm:$0xff] %vm958_vm2, %v1551_v21 }
 0x36d   :  { %v1473_v6 = vpop.permute.xlu1 %1472 }
 0x36e   :  { %1511 = vst.msk [vmem:[#allocation2 + $0x4a] sm:$0xff] %vm877_vm9, %v1473_v6  ;;  %v1609_v31 = vld [vmem:[#allocation2 + $0x58] sm:$0xff]  ;;  %v2773_v6 = vld [vmem:[%s3910_s9 + $0x8] sm:$0xff]  }
 0x36f   :  { %1591 = vst.msk [vmem:[#allocation2 + $0x48] sm:$0xff] %vm958_vm2, %v1553_v19  ;;  %1592 = vst.msk [vmem:[#allocation2 + $0x50] sm:$0xff] %vm958_vm2, %v1555_v36  ;;  %v1483_v40 = vpop.permute.xlu0 %1482  ;;  %2662 = vmatprep.subr.bf16.mxu0 %v2773_v6 }
 0x370   :  { %1516 = vst.msk [vmem:[#allocation2 + $0x72] sm:$0xff] %vm877_vm9, %v1483_v40  ;;  %2663 = vmatpush3.bf16.msra.mxu0 %v2773_v6 }
 0x371   :  { %v1485_v22 = vpop.permute.xlu1 %1484 }
 0x372   :  { %1517 = vst.msk [vmem:[#allocation2 + $0x7a] sm:$0xff] %vm877_vm9, %v1485_v22  ;;  %v2774_v22 = vld [vmem:[%s3910_s9 + $0x10] sm:$0xff]  }
 0x373   :  { %v1479_v1 = vpop.permute.xlu0 %1478  ;;  %v1606_v15 = vld [vmem:[#allocation2 + $0x40] sm:$0xff]  ;;  %2664 = vmatprep.subr.bf16.mxu0 %v2774_v22 }
 0x374   :  { %1514 = vst.msk [vmem:[#allocation2 + $0x62] sm:$0xff] %vm877_vm9, %v1479_v1  ;;  %2665 = vmatpush3.bf16.msra.mxu0 %v2774_v22 }
 0x375   :  { %v1561_v4 = vpop.permute.xlu1 %1560 }
 0x376   :  { %v1607_v49 = vld [vmem:[#allocation2 + $0x48] sm:$0xff]  ;;  %v1608_v23 = vld [vmem:[#allocation2 + $0x50] sm:$0xff] }
 0x377   :  { %v1559_v53 = vpop.permute.xlu0 %1558  ;;  %v1618_v27 = vpack.c.bf16 %v1607_v49, %v1606_v15  ;;  %v1619_v29 = vpack.c.bf16 %v1609_v31, %v1608_v23 }
 0x378   :  { %1594 = vst.msk [vmem:[#allocation2 + $0x60] sm:$0xff] %vm958_vm2, %v1559_v53 }
 0x379   :  { %v1481_v24 = vpop.permute.xlu1 %1480  ;;  %2652 = vmatprep.mubr.msk.bf16.mxu1 %vm277_vm1, %v1618_v27 }
 0x37a   :  { %1515 = vst.msk [vmem:[#allocation2 + $0x6a] sm:$0xff] %vm877_vm9, %v1481_v24  ;;  %2653 = vmatmul.mubr.msk.bf16.gmra.mrb[24].mxu1 %vm277_vm1, %v1619_v29 }
 0x37b   :  { %1595 = vst.msk [vmem:[#allocation2 + $0x68] sm:$0xff] %vm958_vm2, %v1561_v4  ;;  %v1563_v44 = vpop.permute.xlu0 %1562 }
 0x37c   :  { %1596 = vst.msk [vmem:[#allocation2 + $0x70] sm:$0xff] %vm958_vm2, %v1563_v44 }
 0x37d   :  { %v1565_v8 = vpop.permute.xlu1 %1564 }
 0x37e   :  { %1597 = vst.msk [vmem:[#allocation2 + $0x78] sm:$0xff] %vm958_vm2, %v1565_v8 }
 0x37f   :  { %v1610_v30 = vld [vmem:[#allocation2 + $0x60] sm:$0xff] }
 0x382   :  { %v1611_v28 = vld [vmem:[#allocation2 + $0x68] sm:$0xff] }
 0x383   :  { %v1620_v45 = vpack.c.bf16 %v1611_v28, %v1610_v30  ;;  %v1612_v47 = vld [vmem:[#allocation2 + $0x70] sm:$0xff] }
 0x385   :  { %2656 = vmatprep.mubr.msk.bf16.mxu1 %vm277_vm1, %v1620_v45  ;;  %v1613_v48 = vld [vmem:[#allocation2 + $0x78] sm:$0xff] }
 0x386   :  { %v1621_v52 = vpack.c.bf16 %v1613_v48, %v1612_v47 }
 0x388   :  { %2657 = vmatmul.mubr.msk.bf16.gmra.mrb[28].mxu1 %vm277_vm1, %v1621_v52 }
 0x42d   :  { %v2646_v56 = vpop.f32.mrb[16].mxu1 }
 0x42e   :  { %v1720_v57 = vadd.f32 %v2646_v56, %v3670_v54  ;;  %v1711_v58 = vpop.f32.mrb[17].mxu1 }
 0x42f   :  { %v1712_v59 = vadd.f32 %v3670_v54, %v1711_v58  ;;  %v2647_v36 = vpop.f32.mrb[18].mxu1 }
 0x430   :  { %v1776_v60 = vmax.f32 %v1720_v57, 0.0  ;;  %v1723_v61 = vadd.f32 %v2647_v36, %v3670_v54  ;;  %v1714_v37 = vpop.f32.mrb[19].mxu1 }
 0x431   :  { %v1774_v10 = vmax.f32 %v1712_v59, 0.0  ;;  %v1715_v33 = vadd.f32 %v3670_v54, %v1714_v37 }
 0x432   :  { %1809 = vst.msk [vmem:[#allocation2 + $0x14] sm:$0xff] %vm748_vm14, %v1776_v60  ;;  %v1777_v7 = vmax.f32 %v1723_v61, 0.0  ;;  %1859 = vrot.lane.b32.xlu0 %v1776_v60, %s2807_s2 }
 0x433   :  { %1807 = vst.msk [vmem:[#allocation2 + $0x4] sm:$0xff] %vm748_vm14, %v1774_v10  ;;  %v1775_v13 = vmax.f32 %v1715_v33, 0.0 }
 0x434   :  { %v1794_v19 = vsel %vm1345_vm0, %v1777_v7, 0.0  ;;  %1941 = vrot.lane.b32.xlu1 %v1777_v7, %s2808_s28  ;;  %v1826_v40 = vsel %vm282_vm7, %v1777_v7, 0.0  ;;  %vm3935_vm7 = vcmp.lt.s32.totalorder %v3036_v35, 14 }
 0x435   :  { %1810 = vst.msk [vmem:[#allocation2 + $0x1c] sm:$0xff] %vm748_vm14, %v1794_v19  ;;  %v1792_v21 = vsel %vm1343_vm3, %v1775_v13, 0.0  ;;  %v1824_v49 = vsel %vm280_vm5, %v1775_v13, 0.0  ;;  %vm3934_vm5 = vcmp.lt.s32.totalorder %v3004_v26, 12 }
 0x436   :  { %1808 = vst.msk [vmem:[#allocation2 + $0xc] sm:$0xff] %vm748_vm14, %v1792_v21  ;;  %1939 = vrot.lane.b32.xlu0 %v1776_v60, %s2808_s28 }
 0x438   :  { %1861 = vrot.lane.b32.xlu1 %v1826_v40, %s2807_s2 }
 0x43a   :  { %1855 = vrot.lane.b32.xlu0 %v1774_v10, %s2807_s2 }
 0x43c   :  { %1937 = vrot.lane.b32.xlu1 %v1775_v13, %s2808_s28 }
 0x43d   :  { %v2650_v1 = vpop.f32.mrb[20].mxu1 }
 0x43e   :  { %v1736_v4 = vadd.f32 %v2650_v1, %v3670_v54  ;;  %v1727_v31 = vpop.f32.mrb[21].mxu1  ;;  %1935 = vrot.lane.b32.xlu0 %v1774_v10, %s2808_s28 }
 0x43f   :  { %v1728_v16 = vadd.f32 %v3670_v54, %v1727_v31  ;;  %v2651_v15 = vpop.f32.mrb[22].mxu1 }
 0x440   :  { %v1780_v23 = vmax.f32 %v1736_v4, 0.0  ;;  %v1739_v53 = vadd.f32 %v2651_v15, %v3670_v54  ;;  %v1730_v27 = vpop.f32.mrb[23].mxu1  ;;  %1857 = vrot.lane.b32.xlu1 %v1824_v49, %s2807_s2 }
 0x441   :  { %v1778_v29 = vmax.f32 %v1728_v16, 0.0  ;;  %v1731_v24 = vadd.f32 %v3670_v54, %v1730_v27 }
 0x442   :  { %1813 = vst.msk [vmem:[#allocation2 + $0x34] sm:$0xff] %vm748_vm14, %v1780_v23  ;;  %v1781_v44 = vmax.f32 %v1739_v53, 0.0  ;;  %1867 = vrot.lane.b32.xlu0 %v1780_v23, %s2807_s2 }
 0x443   :  { %1811 = vst.msk [vmem:[#allocation2 + $0x24] sm:$0xff] %vm748_vm14, %v1778_v29  ;;  %v1779_v8 = vmax.f32 %v1731_v24, 0.0 }
 0x444   :  { %v1798_v17 = vsel %vm1349_vm4, %v1781_v44, 0.0  ;;  %1949 = vrot.lane.b32.xlu1 %v1781_v44, %s2808_s28  ;;  %v1830_v28 = vsel %vm286_vm10, %v1781_v44, 0.0  ;;  %vm3937_vm10 = vcmp.lt.s32.totalorder %v3104_v51, 14 }
 0x445   :  { %1814 = vst.msk [vmem:[#allocation2 + $0x3c] sm:$0xff] %vm748_vm14, %v1798_v17  ;;  %v1796_v30 = vsel %vm1347_vm6, %v1779_v8, 0.0  ;;  %v1828_v57 = vsel %vm284_vm8, %v1779_v8, 0.0  ;;  %vm3936_vm8 = vcmp.lt.s32.totalorder %v3004_v26, 14 }
 0x446   :  { %1812 = vst.msk [vmem:[#allocation2 + $0x2c] sm:$0xff] %vm748_vm14, %v1796_v30  ;;  %1947 = vrot.lane.b32.xlu0 %v1780_v23, %s2808_s28 }
 0x448   :  { %1869 = vrot.lane.b32.xlu1 %v1830_v28, %s2807_s2 }
 0x44a   :  { %1863 = vrot.lane.b32.xlu0 %v1778_v29, %s2807_s2 }
 0x44c   :  { %1945 = vrot.lane.b32.xlu1 %v1779_v8, %s2808_s28 }
 0x44d   :  { %v2654_v45 = vpop.f32.mrb[24].mxu1 }
 0x44e   :  { %v1752_v47 = vadd.f32 %v2654_v45, %v3670_v54  ;;  %v1743_v48 = vpop.f32.mrb[25].mxu1  ;;  %1943 = vrot.lane.b32.xlu0 %v1778_v29, %s2808_s28 }
 0x44f   :  { %v1744_v52 = vadd.f32 %v3670_v54, %v1743_v48  ;;  %v2655_v56 = vpop.f32.mrb[26].mxu1 }
 0x450   :  { %v1784_v25 = vmax.f32 %v1752_v47, 0.0  ;;  %v1755_v58 = vadd.f32 %v2655_v56, %v3670_v54  ;;  %v1746_v59 = vpop.f32.mrb[27].mxu1  ;;  %1865 = vrot.lane.b32.xlu1 %v1828_v57, %s2807_s2 }
 0x451   :  { %v1782_v36 = vmax.f32 %v1744_v52, 0.0  ;;  %v1747_v60 = vadd.f32 %v3670_v54, %v1746_v59 }
 0x452   :  { %1817 = vst.msk [vmem:[#allocation2 + $0x54] sm:$0xff] %vm748_vm14, %v1784_v25  ;;  %v1785_v61 = vmax.f32 %v1755_v58, 0.0  ;;  %1875 = vrot.lane.b32.xlu0 %v1784_v25, %s2807_s2 }
 0x453   :  { %1815 = vst.msk [vmem:[#allocation2 + $0x44] sm:$0xff] %vm748_vm14, %v1782_v36  ;;  %v1783_v37 = vmax.f32 %v1747_v60, 0.0 }
 0x454   :  { %v1802_v20 = vsel %vm1353_vm12, %v1785_v61, 0.0  ;;  %1957 = vrot.lane.b32.xlu1 %v1785_v61, %s2808_s28  ;;  %v1834_v33 = vsel %vm3935_vm7, %v1785_v61, 0.0 }
 0x455   :  { %1818 = vst.msk [vmem:[#allocation2 + $0x5c] sm:$0xff] %vm748_vm14, %v1802_v20  ;;  %v1800_v10 = vsel %vm3934_vm5, %v1783_v37, 0.0  ;;  %v1832_v4 = vsel %vm3936_vm8, %v1783_v37, 0.0 }
 0x456   :  { %1816 = vst.msk [vmem:[#allocation2 + $0x4c] sm:$0xff] %vm748_vm14, %v1800_v10  ;;  %1955 = vrot.lane.b32.xlu0 %v1784_v25, %s2808_s28 }
 0x458   :  { %1877 = vrot.lane.b32.xlu1 %v1834_v33, %s2807_s2 }
 0x45a   :  { %1871 = vrot.lane.b32.xlu0 %v1782_v36, %s2807_s2 }
 0x45b   :  { %v2658_v38 = vpop.f32.mrb[28].mxu1 }
 0x45c   :  { %v1768_v7 = vadd.f32 %v2658_v38, %v3670_v54  ;;  %v1759_v13 = vpop.f32.mrb[29].mxu1  ;;  %1953 = vrot.lane.b32.xlu1 %v1783_v37, %s2808_s28 }
 0x45d   :  { %v1760_v19 = vadd.f32 %v3670_v54, %v1759_v13  ;;  %v2659_v21 = vpop.f32.mrb[30].mxu1 }
 0x45e   :  { %v1788_v6 = vmax.f32 %v1768_v7, 0.0  ;;  %v1771_v40 = vadd.f32 %v2659_v21, %v3670_v54  ;;  %v1762_v22 = vpop.f32.mrb[31].mxu1  ;;  %1951 = vrot.lane.b32.xlu0 %v1782_v36, %s2808_s28 }
 0x45f   :  { %v1786_v35 = vmax.f32 %v1760_v19, 0.0  ;;  %v1763_v1 = vadd.f32 %v3670_v54, %v1762_v22 }
 0x460   :  { %1821 = vst.msk [vmem:[#allocation2 + $0x74] sm:$0xff] %vm748_vm14, %v1788_v6  ;;  %v1789_v31 = vmax.f32 %v1771_v40, 0.0  ;;  %1873 = vrot.lane.b32.xlu1 %v1832_v4, %s2807_s2 }
 0x461   :  { %1819 = vst.msk [vmem:[#allocation2 + $0x64] sm:$0xff] %vm748_vm14, %v1786_v35  ;;  %v1787_v16 = vmax.f32 %v1763_v1, 0.0 }
 0x462   :  { %v1806_v15 = vsel %vm1357_vm13, %v1789_v31, 0.0  ;;  %1883 = vrot.lane.b32.xlu0 %v1788_v6, %s2807_s2  ;;  %v1838_v49 = vsel %vm3937_vm10, %v1789_v31, 0.0  ;;  %vm3938_vm13 = vmmov %vm3933_vm11 }
 0x463   :  { %1822 = vst.msk [vmem:[#allocation2 + $0x7c] sm:$0xff] %vm748_vm14, %v1806_v15  ;;  %v1804_v26 = vsel %vm1355_vm15, %v1787_v16, 0.0  ;;  %v1836_v54 = vsel %vm3938_vm13, %v1787_v16, 0.0 }
 0x464   :  { %1820 = vst.msk [vmem:[#allocation2 + $0x6c] sm:$0xff] %vm748_vm14, %v1804_v26  ;;  %1885 = vrot.lane.b32.xlu1 %v1838_v49, %s2807_s2 }
 0x466   :  { %1879 = vrot.lane.b32.xlu0 %v1786_v35, %s2807_s2 }
 0x468   :  { %1961 = vrot.lane.b32.xlu1 %v1787_v16, %s2808_s28 }
 0x46a   :  { %1959 = vrot.lane.b32.xlu0 %v1786_v35, %s2808_s28 }
 0x46c   :  { %1881 = vrot.lane.b32.xlu1 %v1836_v54, %s2807_s2 }
 0x46e   :  { %1963 = vrot.lane.b32.xlu0 %v1788_v6, %s2808_s28 }
 0x470   :  { %1965 = vrot.lane.b32.xlu1 %v1789_v31, %s2808_s28 }
 0x4a4   :  { %v1860_v51 = vpop.permute.xlu0 %1859 }
 0x4a5   :  { %1905 = vst.msk [vmem:[#allocation2 + $0x12] sm:$0xff] %vm877_vm9, %v1860_v51 }
 0x4a6   :  { %v1942_v23 = vpop.permute.xlu1 %1941 }
 0x4a8   :  { %v1940_v53 = vpop.permute.xlu0 %1939 }
 0x4aa   :  { %v1862_v27 = vpop.permute.xlu1 %1861 }
 0x4ab   :  { %1906 = vst.msk [vmem:[#allocation2 + $0x1a] sm:$0xff] %vm877_vm9, %v1862_v27 }
 0x4ac   :  { %1986 = vst.msk [vmem:[#allocation2 + $0x18] sm:$0xff] %vm958_vm2, %v1942_v23  ;;  %v1856_v29 = vpop.permute.xlu0 %1855 }
 0x4ad   :  { %1903 = vst.msk [vmem:[#allocation2 + $0x2] sm:$0xff] %vm877_vm9, %v1856_v29 }
 0x4ae   :  { %v1938_v46 = vpop.permute.xlu1 %1937 }
 0x4b0   :  { %v1936_v24 = vpop.permute.xlu0 %1935 }
 0x4b1   :  { %1983 = vst.msk [vmem:[#allocation2] sm:$0xff] %vm958_vm2, %v1936_v24 }
 0x4b2   :  { %v1858_v44 = vpop.permute.xlu1 %1857 }
 0x4b3   :  { %1904 = vst.msk [vmem:[#allocation2 + $0xa] sm:$0xff] %vm877_vm9, %v1858_v44  ;;  %v2002_v45 = vld [vmem:[#allocation2 + $0x18] sm:$0xff] }
 0x4b4   :  { %1984 = vst.msk [vmem:[#allocation2 + $0x8] sm:$0xff] %vm958_vm2, %v1938_v46  ;;  %1985 = vst.msk [vmem:[#allocation2 + $0x10] sm:$0xff] %vm958_vm2, %v1940_v53  ;;  %v1868_v8 = vpop.permute.xlu0 %1867 }
 0x4b5   :  { %1909 = vst.msk [vmem:[#allocation2 + $0x32] sm:$0xff] %vm877_vm9, %v1868_v8 }
 0x4b6   :  { %v1950_v17 = vpop.permute.xlu1 %1949 }
 0x4b8   :  { %v1948_v30 = vpop.permute.xlu0 %1947  ;;  %v1999_v47 = vld [vmem:[#allocation2] sm:$0xff] }
 0x4ba   :  { %v1870_v28 = vpop.permute.xlu1 %1869 }
 0x4bb   :  { %1910 = vst.msk [vmem:[#allocation2 + $0x3a] sm:$0xff] %vm877_vm9, %v1870_v28  ;;  %v2000_v48 = vld [vmem:[#allocation2 + $0x8] sm:$0xff]  ;;  %v2001_v52 = vld [vmem:[#allocation2 + $0x10] sm:$0xff]  ;;  %v2809_v28 = vmov 0.0|0.0  }
 0x4bc   :  { %1990 = vst.msk [vmem:[#allocation2 + $0x38] sm:$0xff] %vm958_vm2, %v1950_v17  ;;  %v1864_v56 = vpop.permute.xlu0 %1863  ;;  %v2015_v57 = vpack.c.bf16 %v2000_v48, %v1999_v47  ;;  %v2016_v25 = vpack.c.bf16 %v2002_v45, %v2001_v52  ;;  %2731 = vmatprep.subr.bf16.mxu1 %v2809_v28  ;;  %v3823_v45 = vld [vmem:[%s3911_s10] ss:$0 sm:$0xff] }
 0x4bd   :  { %1907 = vst.msk [vmem:[#allocation2 + $0x22] sm:$0xff] %vm877_vm9, %v1864_v56 }
 0x4be   :  { %v1946_v58 = vpop.permute.xlu1 %1945  ;;  %2666 = vmatprep.mubr.msk.bf16.mxu0 %vm277_vm1, %v2015_v57 }
 0x4bf   :  { %2667 = vmatmul.mubr.msk.bf16.vlgmr.msra.gmra.mrb[32].mxu0 %vm277_vm1, %v2016_v25 }
 0x4c0   :  { %v1944_v59 = vpop.permute.xlu0 %1943 }
 0x4c1   :  { %1987 = vst.msk [vmem:[#allocation2 + $0x20] sm:$0xff] %vm958_vm2, %v1944_v59 }
 0x4c2   :  { %v1866_v36 = vpop.permute.xlu1 %1865 }
 0x4c3   :  { %1908 = vst.msk [vmem:[#allocation2 + $0x2a] sm:$0xff] %vm877_vm9, %v1866_v36  ;;  %v2006_v10 = vld [vmem:[#allocation2 + $0x38] sm:$0xff] }
 0x4c4   :  { %1988 = vst.msk [vmem:[#allocation2 + $0x28] sm:$0xff] %vm958_vm2, %v1946_v58  ;;  %1989 = vst.msk [vmem:[#allocation2 + $0x30] sm:$0xff] %vm958_vm2, %v1948_v30  ;;  %v1876_v60 = vpop.permute.xlu0 %1875 }
 0x4c5   :  { %1913 = vst.msk [vmem:[#allocation2 + $0x52] sm:$0xff] %vm877_vm9, %v1876_v60 }
 0x4c6   :  { %v1958_v61 = vpop.permute.xlu1 %1957 }
 0x4c8   :  { %v1956_v37 = vpop.permute.xlu0 %1955  ;;  %v2003_v33 = vld [vmem:[#allocation2 + $0x20] sm:$0xff] }
 0x4ca   :  { %v1878_v20 = vpop.permute.xlu1 %1877 }
 0x4cb   :  { %1914 = vst.msk [vmem:[#allocation2 + $0x5a] sm:$0xff] %vm877_vm9, %v1878_v20  ;;  %v2004_v38 = vld [vmem:[#allocation2 + $0x28] sm:$0xff]  ;;  %v2005_v7 = vld [vmem:[#allocation2 + $0x30] sm:$0xff] }
 0x4cc   :  { %1994 = vst.msk [vmem:[#allocation2 + $0x58] sm:$0xff] %vm958_vm2, %v1958_v61  ;;  %v1872_v13 = vpop.permute.xlu0 %1871  ;;  %v2017_v19 = vpack.c.bf16 %v2004_v38, %v2003_v33  ;;  %v2018_v21 = vpack.c.bf16 %v2006_v10, %v2005_v7 }
 0x4cd   :  { %1911 = vst.msk [vmem:[#allocation2 + $0x42] sm:$0xff] %vm877_vm9, %v1872_v13 }
 0x4ce   :  { %v1954_v6 = vpop.permute.xlu1 %1953  ;;  %2670 = vmatprep.mubr.msk.bf16.mxu0 %vm277_vm1, %v2017_v19 }
 0x4cf   :  { %2671 = vmatmul.mubr.msk.bf16.gmra.mrb[36].mxu0 %vm277_vm1, %v2018_v21 }
 0x4d0   :  { %v1952_v40 = vpop.permute.xlu0 %1951 }
 0x4d1   :  { %1991 = vst.msk [vmem:[#allocation2 + $0x40] sm:$0xff] %vm958_vm2, %v1952_v40 }
 0x4d2   :  { %v1874_v22 = vpop.permute.xlu1 %1873 }
 0x4d3   :  { %1912 = vst.msk [vmem:[#allocation2 + $0x4a] sm:$0xff] %vm877_vm9, %v1874_v22  ;;  %v2010_v16 = vld [vmem:[#allocation2 + $0x58] sm:$0xff] }
 0x4d4   :  { %1992 = vst.msk [vmem:[#allocation2 + $0x48] sm:$0xff] %vm958_vm2, %v1954_v6  ;;  %1993 = vst.msk [vmem:[#allocation2 + $0x50] sm:$0xff] %vm958_vm2, %v1956_v37  ;;  %v1884_v35 = vpop.permute.xlu0 %1883 }
 0x4d5   :  { %1917 = vst.msk [vmem:[#allocation2 + $0x72] sm:$0xff] %vm877_vm9, %v1884_v35 }
 0x4d6   :  { %v1886_v1 = vpop.permute.xlu1 %1885 }
 0x4d7   :  { %1918 = vst.msk [vmem:[#allocation2 + $0x7a] sm:$0xff] %vm877_vm9, %v1886_v1 }
 0x4d8   :  { %v1880_v4 = vpop.permute.xlu0 %1879  ;;  %v2007_v15 = vld [vmem:[#allocation2 + $0x40] sm:$0xff] }
 0x4d9   :  { %1915 = vst.msk [vmem:[#allocation2 + $0x62] sm:$0xff] %vm877_vm9, %v1880_v4 }
 0x4da   :  { %v1962_v31 = vpop.permute.xlu1 %1961 }
 0x4db   :  { %v2008_v49 = vld [vmem:[#allocation2 + $0x48] sm:$0xff]  ;;  %v2009_v26 = vld [vmem:[#allocation2 + $0x50] sm:$0xff] }
 0x4dc   :  { %v1960_v54 = vpop.permute.xlu0 %1959  ;;  %v2019_v51 = vpack.c.bf16 %v2008_v49, %v2007_v15  ;;  %v2020_v23 = vpack.c.bf16 %v2010_v16, %v2009_v26 }
 0x4dd   :  { %1995 = vst.msk [vmem:[#allocation2 + $0x60] sm:$0xff] %vm958_vm2, %v1960_v54 }
 0x4de   :  { %v1882_v53 = vpop.permute.xlu1 %1881  ;;  %2674 = vmatprep.mubr.msk.bf16.mxu0 %vm277_vm1, %v2019_v51 }
 0x4df   :  { %1916 = vst.msk [vmem:[#allocation2 + $0x6a] sm:$0xff] %vm877_vm9, %v1882_v53  ;;  %2675 = vmatmul.mubr.msk.bf16.gmra.mrb[40].mxu0 %vm277_vm1, %v2020_v23  ;;  %vm2810_vm9 = vmmov 0  }
 0x4e0   :  { %1996 = vst.msk [vmem:[#allocation2 + $0x68] sm:$0xff] %vm958_vm2, %v1962_v31  ;;  %v1964_v27 = vpop.permute.xlu0 %1963  ;;  %2714 = vmatprep.mubr.msk.f32.mxu1 %vm2810_vm9, %v2803_v9 }
 0x4e1   :  { %1997 = vst.msk [vmem:[#allocation2 + $0x70] sm:$0xff] %vm958_vm2, %v1964_v27 }
 0x4e2   :  { %v1966_v29 = vpop.permute.xlu1 %1965 }
 0x4e3   :  { %1998 = vst.msk [vmem:[#allocation2 + $0x78] sm:$0xff] %vm958_vm2, %v1966_v29  ;;  %vm2428_vm2 = vcmask 97280  }
 0x4e4   :  { %v2011_v46 = vld [vmem:[#allocation2 + $0x60] sm:$0xff] }
 0x4e7   :  { %v2012_v24 = vld [vmem:[#allocation2 + $0x68] sm:$0xff] }
 0x4e8   :  { %v2021_v44 = vpack.c.bf16 %v2012_v24, %v2011_v46  ;;  %v2013_v8 = vld [vmem:[#allocation2 + $0x70] sm:$0xff] }
 0x4ea   :  { %2678 = vmatprep.mubr.msk.bf16.mxu0 %vm277_vm1, %v2021_v44  ;;  %v2014_v17 = vld [vmem:[#allocation2 + $0x78] sm:$0xff] }
 0x4eb   :  { %v2022_v30 = vpack.c.bf16 %v2014_v17, %v2013_v8 }
 0x4ed   :  { %2679 = vmatmul.mubr.msk.bf16.gmra.mrb[44].mxu0 %vm277_vm1, %v2022_v30 }
 0x592   :  { %v2668_v47 = vpop.f32.mrb[32].mxu0 }
 0x593   :  { %v2121_v48 = vadd.f32 %v2668_v47, %v3823_v45  ;;  %v2112_v52 = vpop.f32.mrb[33].mxu0 }
 0x594   :  { %v2113_v56 = vadd.f32 %v3823_v45, %v2112_v52  ;;  %v2669_v57 = vpop.f32.mrb[34].mxu0 }
 0x595   :  { %v2177_v25 = vmax.f32 %v2121_v48, 0.0  ;;  %v2124_v58 = vadd.f32 %v2669_v57, %v3823_v45  ;;  %v2115_v59 = vpop.f32.mrb[35].mxu0 }
 0x596   :  { %v2175_v36 = vmax.f32 %v2113_v56, 0.0  ;;  %v2116_v60 = vadd.f32 %v3823_v45, %v2115_v59 }
 0x597   :  { %v2193_v61 = vadd.f32 %v2177_v25, %v3420_v62  ;;  %v2178_v37 = vmax.f32 %v2124_v58, 0.0 }
 0x598   :  { %v2191_v20 = vadd.f32 %v2175_v36, %v3423_v43  ;;  %v2176_v10 = vmax.f32 %v2116_v60, 0.0 }
 0x599   :  { %v2194_v33 = vadd.f32 %v2178_v37, %v3428_v11  ;;  %v2209_v7 = vmax.f32 %v2193_v61, 0.0 }
 0x59a   :  { %v2192_v38 = vadd.f32 %v2176_v10, %v3434_v12  ;;  %v2207_v19 = vmax.f32 %v2191_v20, 0.0 }
 0x59b   :  { %v2210_v13 = vmax.f32 %v2194_v33, 0.0 }
 0x59c   :  { %v2208_v21 = vmax.f32 %v2192_v38, 0.0 }
 0x59d   :  { %v2735_v6 = vpack.c.bf16 %v2210_v13, %v2209_v7 }
 0x59e   :  { %v2732_v40 = vpack.c.bf16 %v2208_v21, %v2207_v19 }
 0x5a0   :  { %2733 = vmatpush3.bf16.msra.mxu1 %v2732_v40 }
 0x5a1   :  { %2734 = vmatprep.subr.bf16.mxu1 %v2809_v28 }
 0x5a2   :  { %v2672_v22 = vpop.f32.mrb[36].mxu0 }
 0x5a3   :  { %v2137_v62 = vadd.f32 %v2672_v22, %v3823_v45  ;;  %v2128_v35 = vpop.f32.mrb[37].mxu0 }
 0x5a4   :  { %v2129_v43 = vadd.f32 %v3823_v45, %v2128_v35  ;;  %v2673_v1 = vpop.f32.mrb[38].mxu0  ;;  %2736 = vmatpush3.bf16.msra.mxu1 %v2735_v6 }
 0x5a5   :  { %v2181_v11 = vmax.f32 %v2137_v62, 0.0  ;;  %v2140_v12 = vadd.f32 %v2673_v1, %v3823_v45  ;;  %v2131_v4 = vpop.f32.mrb[39].mxu0  ;;  %2737 = vmatprep.subr.bf16.mxu1 %v2809_v28 }
 0x5a6   :  { %v2179_v31 = vmax.f32 %v2129_v43, 0.0  ;;  %v2132_v16 = vadd.f32 %v3823_v45, %v2131_v4 }
 0x5a7   :  { %v2197_v15 = vadd.f32 %v2181_v11, %v3474_v50  ;;  %v2182_v49 = vmax.f32 %v2140_v12, 0.0 }
 0x5a8   :  { %v2195_v26 = vadd.f32 %v2179_v31, %v3478_v0  ;;  %v2180_v54 = vmax.f32 %v2132_v16, 0.0  ;;  %v2225_v16 = vmul.u32 16, %v2920_v5  ;;  %v2775_v5 = vld [vmem:[%s3912_s11] sm:$0xff]  }
 0x5a9   :  { %v2198_v51 = vadd.f32 %v2182_v49, %v3483_v3  ;;  %v2213_v53 = vmax.f32 %v2197_v15, 0.0 }
 0x5aa   :  { %v2196_v23 = vadd.f32 %v2180_v54, %v3489_v55  ;;  %v2211_v29 = vmax.f32 %v2195_v26, 0.0  ;;  %v2226_v49 = vadd.s32 15, %v2225_v16  ;;  %v2777_v26 = vld [vmem:[%s3914_s13 + $0x8] sm:$0xff]   ;;  %v2500_v54 = vld [vmem:[%s3913_s12] ss:$0 sm:$0xff] }
 0x5ab   :  { %v2214_v27 = vmax.f32 %v2198_v51, 0.0 }
 0x5ac   :  { %v2212_v46 = vmax.f32 %v2196_v23, 0.0 }
 0x5ad   :  { %v2741_v24 = vpack.c.bf16 %v2214_v27, %v2213_v53 }
 0x5ae   :  { %v2738_v44 = vpack.c.bf16 %v2212_v46, %v2211_v29 }
 0x5b0   :  { %2739 = vmatpush3.bf16.msra.mxu1 %v2738_v44 }
 0x5b1   :  { %2740 = vmatprep.subr.bf16.mxu1 %v2809_v28 }
 0x5b2   :  { %v2676_v8 = vpop.f32.mrb[40].mxu0 }
 0x5b3   :  { %v2153_v50 = vadd.f32 %v2676_v8, %v3823_v45  ;;  %v2144_v17 = vpop.f32.mrb[41].mxu0 }
 0x5b4   :  { %v2145_v0 = vadd.f32 %v3823_v45, %v2144_v17  ;;  %v2677_v30 = vpop.f32.mrb[42].mxu0  ;;  %2742 = vmatpush3.bf16.msra.mxu1 %v2741_v24 }
 0x5b5   :  { %v2185_v3 = vmax.f32 %v2153_v50, 0.0  ;;  %v2156_v55 = vadd.f32 %v2677_v30, %v3823_v45  ;;  %v2147_v47 = vpop.f32.mrb[43].mxu0  ;;  %2743 = vmatprep.subr.bf16.mxu1 %v2809_v28 }
 0x5b6   :  { %v2183_v48 = vmax.f32 %v2145_v0, 0.0  ;;  %v2148_v52 = vadd.f32 %v3823_v45, %v2147_v47 }
 0x5b7   :  { %v2201_v56 = vadd.f32 %v2185_v3, %v3528_v18  ;;  %v2186_v57 = vmax.f32 %v2156_v55, 0.0 }
 0x5b8   :  { %v2199_v25 = vadd.f32 %v2183_v48, %v3532_v32  ;;  %v2184_v58 = vmax.f32 %v2148_v52, 0.0 }
 0x5b9   :  { %v2202_v59 = vadd.f32 %v2186_v57, %v3537_v34  ;;  %v2217_v60 = vmax.f32 %v2201_v56, 0.0 }
 0x5ba   :  { %v2200_v36 = vadd.f32 %v2184_v58, %v3543_v41  ;;  %v2215_v37 = vmax.f32 %v2199_v25, 0.0 }
 0x5bb   :  { %v2218_v61 = vmax.f32 %v2202_v59, 0.0 }
 0x5bc   :  { %v2216_v20 = vmax.f32 %v2200_v36, 0.0 }
 0x5bd   :  { %v2747_v10 = vpack.c.bf16 %v2218_v61, %v2217_v60 }
 0x5be   :  { %v2744_v33 = vpack.c.bf16 %v2216_v20, %v2215_v37 }
 0x5c0   :  { %v2680_v38 = vpop.f32.mrb[44].mxu0  ;;  %2745 = vmatpush3.bf16.msra.mxu1 %v2744_v33 }
 0x5c1   :  { %v2169_v7 = vadd.f32 %v2680_v38, %v3823_v45  ;;  %v2160_v13 = vpop.f32.mrb[45].mxu0  ;;  %2746 = vmatprep.subr.bf16.mxu1 %v2809_v28 }
 0x5c2   :  { %v2161_v18 = vadd.f32 %v3823_v45, %v2160_v13  ;;  %v2681_v32 = vpop.f32.mrb[46].mxu0 }
 0x5c3   :  { %v2189_v19 = vmax.f32 %v2169_v7, 0.0  ;;  %v2172_v34 = vadd.f32 %v2681_v32, %v3823_v45  ;;  %v2163_v41 = vpop.f32.mrb[47].mxu0 }
 0x5c4   :  { %v2187_v21 = vmax.f32 %v2161_v18, 0.0  ;;  %v2164_v6 = vadd.f32 %v3823_v45, %v2163_v41  ;;  %2748 = vmatpush3.bf16.msra.mxu1 %v2747_v10 }
 0x5c5   :  { %v2205_v40 = vadd.f32 %v2189_v19, %v3579_v14  ;;  %v2190_v22 = vmax.f32 %v2172_v34, 0.0  ;;  %2749 = vmatprep.subr.bf16.mxu1 %v2809_v28  ;;  %v2224_v14 = vand.u32 127, %v52_v2 }
 0x5c6   :  { %v2203_v62 = vadd.f32 %v2187_v21, %v3585_v63  ;;  %v2188_v35 = vmax.f32 %v2164_v6, 0.0  ;;  %v2811_v63 = vmov 1.0  }
 0x5c7   :  { %v2206_v43 = vadd.f32 %v2190_v22, %v3591_v39  ;;  %v2221_v11 = vmax.f32 %v2205_v40, 0.0  ;;  %vm2227_vm1 = vcmp.eq.s32.totalorder %v2224_v14, %v2226_v49 }
 0x5c8   :  { %v2204_v1 = vadd.f32 %v2188_v35, %v3595_v42  ;;  %v2219_v4 = vmax.f32 %v2203_v62, 0.0 }
 0x5c9   :  { %v2222_v12 = vmax.f32 %v2206_v43, 0.0 }
 0x5ca   :  { %v2220_v31 = vmax.f32 %v2204_v1, 0.0 }
 0x5cb   :  { %v2753_v45 = vpack.c.bf16 %v2222_v12, %v2221_v11 }
 0x5cc   :  { %v2750_v15 = vpack.c.bf16 %v2220_v31, %v2219_v4 }
 0x5ce   :  { %2751 = vmatpush3.bf16.msra.mxu1 %v2750_v15 }
 0x5cf   :  { %2752 = vmatprep.subr.bf16.mxu1 %v2809_v28  ;;  %v2776_v28 = vld [vmem:[%s3914_s13] sm:$0xff]   ;;  %s2436_s13 = sshll.u32 %s2812_s19, 4  ;;  %s2437_s13 = int_to_ptr.vmem [resolvable:$true] %s2436_s13 }
 0x5d0   :  { %s2778_s12 = scalar_lea.vmem %s2437_s13, 128  ;;  %p2783_p1 = scmp.lt.s32.totalorder %s2437_s13, %s2437_s13 }
 0x5d1   :  { %p2779_p0 = scmp.ne.s32.totalorder %s2437_s13, %s2778_s12  ;;  %p2784_p2 = scmp.lt.s32.totalorder %s2778_s12, %s2778_s12 }
 0x5d2   :  { %2754 = vmatpush3.bf16.msra.mxu1 %v2753_v45 }
 0x5d3   :  { %2717 = vmatprep.subr.bf16.mxu1 %v2803_v9  ;;  %p2785_p3 = por %p2784_p2, %p2783_p1 }
 0x5d5   :  { %2715 = vmatmul.mubr.msk.f32.vlgmr.msra.gmra.mrb[32].mxu1 %vm2227_vm1, %v2811_v63  ;;  %p2786_p4 = pnand %p2785_p3, %p2779_p0 }
 0x5d6   :  { %2719 = vmatprep.mubr.msk.bf16.mxu1 %vm2810_vm9, %v2803_v9  ;;  %2718 = vmatpush3.bf16.msra.mxu1 %v2775_v5 }
 0x5d7   :  { %2723 = vmatprep.subr.bf16.mxu1 %v2803_v9 }
 0x6a8   :  { %v2296_v2 = vpop.f32.mrb[32].mxu1 }
 0x6a9   :  { %v2300_v39 = vpack.c.bf16 %v2296_v2, %v2296_v2  ;;  %v2716_v42 = vpop.f32.mrb[33].mxu1 }
 0x6ab   :  { %2720 = vmatmul.mubr.msk.bf16.vlgmr.msra.gmra.mrb[36].mxu1 %vm748_vm14, %v2300_v39  ;;  %vm2384_vm14 = vcmask 261120  }
 0x6ac   :  { %2727 = vmatprep.mubr.msk.bf16.mxu1 %vm2810_vm9, %v2803_v9  ;;  %2724 = vmatpush3.bf16.msra.mxu1 %v2776_v28 }
 0x6ad   :  { %2725 = vmatprep.subr.bf16.mxu1 %v2803_v9  ;;  %v2503_v9 = vld [vmem:[%s3915_s14] ss:$0 sm:$0xff] }
 0x6b0   :  { %2726 = vmatpush3.bf16.msra.mxu1 %v2777_v26 }
 0x77e   :  { %v2353_v51 = vpop.f32.mrb[36].mxu1 }
 0x77f   :  { %v2354_v23 = vadd.f32 %v2500_v54, %v2353_v51  ;;  %v2721_v53 = vpop.f32.mrb[37].mxu1 }
 0x780   :  { %v2356_v27 = vpop.f32.mrb[38].mxu1 }
 0x781   :  { %v2359_v29 = vmax.f32 %v2354_v23, 0.0  ;;  %v2722_v46 = vpop.f32.mrb[39].mxu1 }
 0x783   :  { %v2360_v24 = vpack.c.bf16 %v2359_v29, %v2359_v29 }
 0x785   :  { %2728 = vmatmul.mubr.msk.bf16.vlgmr.msra.gmra.mrb[40].mxu1 %vm2384_vm14, %v2360_v24 }
 0x858   :  { %v2422_v44 = vpop.f32.mrb[40].mxu1 }
 0x859   :  { %v2423_v8 = vadd.f32 %v2503_v9, %v2422_v44  ;;  %v2729_v50 = vpop.f32.mrb[41].mxu1 }
 0x85a   :  { %v2425_v17 = vpop.f32.mrb[42].mxu1 }
 0x85b   :  { %v2730_v0 = vpop.f32.mrb[43].mxu1  ;;  %2429 = vst.msk [vmem:[#allocation3] sm:$0xff] %vm2428_vm2, %v2423_v8 }
 0x85c   :  { %2789 = shalt.err (!%p2786_p4)
}
 0x85d   :  { %s2790_s14 = scalar_lea.hbm %s3916_s15, 128 }
 0x85e   :  { %p2791_p5 = scmp.ne.s32.totalorder %s3916_s15, %s2790_s14  ;;  %p2794_p6 = scmp.lt.u32.totalorder %s2790_s14, %s3916_s15 }
 0x860   :  { %p2796_p7 = pnand %p2794_p6, %p2791_p5 }
 0x862   :  { %2799 = shalt.err (!%p2796_p7)
}
 0x863   :  { %2439 = dma.vmem_to_hbm [thread:$0]  %s2437_s13, 128, %s3916_s15, [#allocation4]  }
 0x864   :  { %2800 = dma.done.wait [#allocation4], 128  }
 0x865   :  { %2801 = vsyncadd [#allocation4], 4294967168 }
 0x866   :  { %2443 = vsyncpa [#allocation4], 1 }

</bundles_post_ra>
